<compile_context>
chip_gen: v7x
topology: tpu7x:2x2x1
jax: 0.10.0
libtpu: 0.0.40
codegen_flags: <defaults>
</compile_context>

<pallas_src>
import jax
import jax.numpy as jnp
import numpy as np
from jax import lax
from jax.experimental import pallas as pl
from jax.experimental.pallas import tpu as pltpu

EPS = 1e-5       # PyTorch GroupNorm default eps
GROUPS = 8       # nn.GroupNorm(8, out_channels)


# ---------------------------------------------------------------------------
# Fused kernel (one batch element per grid step)
# ---------------------------------------------------------------------------
def _make_kernel(H, W, Cin, Cout, has_shortcut):
    HW = H * W
    nflat = HW + 2 * W + 2     # 1 safety + W top-pad + H*W image + W bottom-pad + 1 safety

    def kernel(*refs):
        if has_shortcut:
            (x_ref, t_ref, masks_ref, pmat_ref, w1_ref, w2_ref, wt_ref,
             vec_ref, wsc_ref, out_ref, pad1_ref, pad2_ref) = refs
        else:
            (x_ref, t_ref, masks_ref, pmat_ref, w1_ref, w2_ref, wt_ref,
             vec_ref, out_ref, pad1_ref, pad2_ref) = refs
            wsc_ref = None

        # packed per-channel vectors: [b1, g1, be1, bt, b2, g2, be2, bsc]
        b1, g1, be1 = vec_ref[:, 0:1], vec_ref[:, 1:2], vec_ref[:, 2:3]
        bt = vec_ref[:, 3:4]
        b2, g2, be2 = vec_ref[:, 4:5], vec_ref[:, 5:6], vec_ref[:, 6:7]
        mask_l = masks_ref[0:1, :]          # (1, HW) f32: 0 where col == 0
        mask_r = masks_ref[1:2, :]          # (1, HW) f32: 0 where col == W-1

        # Re-zero only the halo lanes every step (the image lanes are fully
        # overwritten each step).  Never gate this on program_id: under the
        # parallel batch axis each core only sees a subset of the steps.
        for ref, c in ((pad1_ref, Cin), (pad2_ref, Cout)):
            zhalo = jnp.zeros((c, W + 1), dtype=ref.dtype)
            ref[:, 0:W + 1] = zhalo
            ref[:, W + 1 + HW:nflat] = zhalo

        def conv3x3(src_ref, C, w_ref, b):
            # im2col over the flat zero-padded image: each tap is a pure lane
            # slice of src_ref (start = dy*W + dx); wrap-around at the
            # left/right image edge is killed by the column masks.  Single MXU
            # matmul with K = 9*C, bf16 operands, f32 accumulation.
            # bf16 sublane-concat needs 16-row-aligned pieces; otherwise build
            # the stack in f32 (native 8-row tile) and downcast once.
            cat_dt = jnp.bfloat16 if C % 16 == 0 else jnp.float32
            ml = jnp.broadcast_to(mask_l.astype(cat_dt), (C, HW))   # hoisted
            mr = jnp.broadcast_to(mask_r.astype(cat_dt), (C, HW))
            taps = []
            for dy in range(3):
                for dx in range(3):
                    tap = src_ref[:, dy * W + dx: dy * W + dx + HW].astype(cat_dt)
                    if dx == 0:
                        tap = tap * ml
                    elif dx == 2:
                        tap = tap * mr
                    taps.append(tap)
            patch = jnp.concatenate(taps, axis=0).astype(jnp.bfloat16)  # (9C, HW)
            acc = jnp.dot(w_ref[...], patch, preferred_element_type=jnp.float32)
            return acc + b                                          # (Cout, HW) f32

        def gn_silu(acc, g, be):
            # exact two-pass GroupNorm; pmat folds group map & 1/(cpg*H*W).
            mean = jnp.dot(pmat_ref[...],
                           jnp.sum(acc, axis=1, keepdims=True),
                           preferred_element_type=jnp.float32)      # (Cout, 1)
            ctr = acc - mean
            var = jnp.dot(pmat_ref[...],
                          jnp.sum(ctr * ctr, axis=1, keepdims=True),
                          preferred_element_type=jnp.float32)       # (Cout, 1)
            y = ctr * lax.rsqrt(jnp.maximum(var, 0.0) + EPS)
            y = y * g + be
            return y * jax.nn.sigmoid(y)                            # SiLU (f32)

        # ---- stage 1: pad(x) -> conv1 -> GN1 -> SiLU -> + time embedding ----
        xin = x_ref[...]                                            # (Cin, HW) f32
        pad1_ref[:, W + 1: W + 1 + HW] = xin.astype(pad1_ref.dtype)
        h = gn_silu(conv3x3(pad1_ref, Cin, w1_ref, b1), g1, be1)
        temb = jnp.sum(wt_ref[...] * t_ref[...], axis=1, keepdims=True) + bt
        h = h + temb                                                # lane-broadcast

        # ---- stage 2: pad(h) -> conv2 -> GN2 -> SiLU -> + shortcut ----
        pad2_ref[:, W + 1: W + 1 + HW] = h.astype(pad2_ref.dtype)
        h2 = gn_silu(conv3x3(pad2_ref, Cout, w2_ref, b2), g2, be2)

        if has_shortcut:                                            # 1x1 conv (f32)
            sc = jnp.dot(wsc_ref[...], xin,
                         preferred_element_type=jnp.float32) + vec_ref[:, 7:8]
        else:                                                       # exact identity
            sc = xin
        out_ref[...] = (h2 + sc).astype(out_ref.dtype)

    return kernel


# ---------------------------------------------------------------------------
# Wrapper (metadata-only reshapes; no HBM pad / slice round trips)
# ---------------------------------------------------------------------------
def residual_block_forward(x_nchw, t, params):
    B, Cin, H, W = x_nchw.shape
    Cout = params["g1"].shape[0]
    Tdim = t.shape[-1]
    HW = H * W
    nflat = HW + 2 * W + 2
    cpg = Cout // GROUPS
    has_shortcut = "wsc" in params

    xf = x_nchw.astype(jnp.float32).reshape(B, Cin, HW)
    t3 = t.astype(jnp.float32).reshape(B, 1, Tdim)

    # Column masks for the left / right conv taps over the flat H*W grid.
    col = np.arange(HW) % W
    masks = jnp.asarray(np.stack([(col != 0), (col != W - 1)]).astype(np.float32))

    # Group-aggregation matrix: per-channel sums -> broadcast group means
    # (folds the 1/(cpg*H*W) normalization).  Tiny (Cout, Cout) f32.
    gidx = np.arange(Cout) // cpg
    pmat = jnp.asarray((gidx[:, None] == gidx[None, :]).astype(np.float32)
                       / float(cpg * HW))

    zcol = jnp.zeros((Cout, 1), jnp.float32)
    vec = jnp.concatenate(
        [params["b1"], params["g1"], params["be1"], params["bt"],
         params["b2"], params["g2"], params["be2"],
         params["bsc"] if has_shortcut else zcol], axis=1).astype(jnp.float32)

    bf16 = lambda a: a.astype(jnp.bfloat16)
    args = [xf, t3, masks, pmat, bf16(params["w1"]), bf16(params["w2"]),
            params["wt"].astype(jnp.float32), vec]
    if has_shortcut:
        args.append(params["wsc"].astype(jnp.float32))

    def _rep(a):                   # whole-array block, identical for every grid step
        nd = a.ndim
        return pl.BlockSpec(a.shape, lambda b: (0,) * nd)

    in_specs = ([pl.BlockSpec((None, Cin, HW), lambda b: (b, 0, 0)),
                 pl.BlockSpec((None, 1, Tdim), lambda b: (b, 0, 0))]
                + [_rep(a) for a in args[2:]])

    out = pl.pallas_call(
        _make_kernel(H, W, Cin, Cout, has_shortcut),
        out_shape=jax.ShapeDtypeStruct((B, Cout, HW), jnp.float32),
        grid_spec=pltpu.PrefetchScalarGridSpec(
            num_scalar_prefetch=0,
            grid=(B,),
            in_specs=in_specs,
            out_specs=pl.BlockSpec((None, Cout, HW), lambda b: (b, 0, 0)),
            scratch_shapes=[pltpu.VMEM((Cin, nflat), jnp.bfloat16),
                            pltpu.VMEM((Cout, nflat), jnp.bfloat16)]),
        compiler_params=pltpu.CompilerParams(
            dimension_semantics=("parallel",),
            vmem_limit_bytes=32 * 1024 * 1024),
    )(*args)

    return out.reshape(B, Cout, H, W)


# ---------------------------------------------------------------------------
# Deterministic synthetic parameters (shapes mirror the PyTorch __init__)
# ---------------------------------------------------------------------------
def init_params(key, cin, cout, tdim):
    ks = jax.random.split(key, 12)
    p = {
        "w1": 0.1 * jax.random.normal(ks[0], (cout, 9 * cin), jnp.float32),
        "b1": 0.05 * jax.random.normal(ks[1], (cout, 1), jnp.float32),
        "g1": 1.0 + 0.1 * jax.random.normal(ks[2], (cout, 1), jnp.float32),
        "be1": 0.1 * jax.random.normal(ks[3], (cout, 1), jnp.float32),
        "w2": 0.1 * jax.random.normal(ks[4], (cout, 9 * cout), jnp.float32),
        "b2": 0.05 * jax.random.normal(ks[5], (cout, 1), jnp.float32),
        "g2": 1.0 + 0.1 * jax.random.normal(ks[6], (cout, 1), jnp.float32),
        "be2": 0.1 * jax.random.normal(ks[7], (cout, 1), jnp.float32),
        "wt": 0.1 * jax.random.normal(ks[8], (cout, tdim), jnp.float32),
        "bt": 0.05 * jax.random.normal(ks[9], (cout, 1), jnp.float32),
    }
    if cin != cout:                      # nn.Conv2d(in, out, 1)
        p["wsc"] = 0.1 * jax.random.normal(ks[10], (cout, cin), jnp.float32)
        p["bsc"] = 0.05 * jax.random.normal(ks[11], (cout, 1), jnp.float32)
    return p                             # Cin == Cout -> nn.Identity (no params)


# ---------------------------------------------------------------------------
# Pure-JAX reference (mirrors the PyTorch forward) for the correctness check
# ---------------------------------------------------------------------------
def reference_forward(x, t, params):
    x = x.astype(jnp.float32)
    B, Cin, H, W = x.shape
    Cout = params["g1"].shape[0]

    def conv3x3(inp, wflat, b):
        ci = inp.shape[1]
        w = wflat.reshape(Cout, 3, 3, ci).transpose(0, 3, 1, 2)   # OIHW
        y = lax.conv_general_dilated(inp, w, (1, 1), "SAME",
                                     dimension_numbers=("NCHW", "OIHW", "NCHW"))
        return y + b.reshape(1, Cout, 1, 1)

    def gn(h, g, be):
        hg = h.reshape(B, GROUPS, Cout // GROUPS, H, W)
        mean = hg.mean(axis=(2, 3, 4), keepdims=True)
        var = ((hg - mean) ** 2).mean(axis=(2, 3, 4), keepdims=True)
        hn = ((hg - mean) / jnp.sqrt(var + EPS)).reshape(B, Cout, H, W)
        return hn * g.reshape(1, Cout, 1, 1) + be.reshape(1, Cout, 1, 1)

    h = jax.nn.silu(gn(conv3x3(x, params["w1"], params["b1"]),
                       params["g1"], params["be1"]))
    temb = t @ params["wt"].T + params["bt"].reshape(1, Cout)
    h = h + temb[:, :, None, None]
    h = jax.nn.silu(gn(conv3x3(h, params["w2"], params["b2"]),
                       params["g2"], params["be2"]))
    if "wsc" in params:
        sc = jnp.einsum("bchw,dc->bdhw", x, params["wsc"]) \
            + params["bsc"].reshape(1, Cout, 1, 1)
    else:
        sc = x
    return h + sc


if __name__ == "__main__":
    B, H, W, Tdim = 2, 16, 16, 32
    key = jax.random.PRNGKey(0)
    # (8 -> 16): 1x1-conv shortcut path; (16 -> 16): identity shortcut path.
    for cin, cout in [(8, 16), (16, 16)]:
        key, kx, kt, kp = jax.random.split(key, 4)
        x = jax.random.normal(kx, (B, cin, H, W), jnp.float32)   # NCHW like PyTorch
        t = jax.random.normal(kt, (B, Tdim), jnp.float32)
        params = init_params(kp, cin, cout, Tdim)

        out = jax.block_until_ready(residual_block_forward(x, t, params))
        assert out.shape == (B, cout, H, W)

        ref = reference_forward(x, t, params)
        np.testing.assert_allclose(np.asarray(out), np.asarray(ref),
                                   atol=5e-2, rtol=5e-2)

    print("KERNEL_OK")
</pallas_src>

<mosaic_0001>
module attributes {stable_mosaic.version = 11 : i64} {
  func.func @kernel(%arg0: i32, %arg1: memref<1x8x256xf32, #tpu.memory_space<vmem>>, %arg2: memref<1x1x32xf32, #tpu.memory_space<vmem>>, %arg3: memref<2x256xf32, #tpu.memory_space<vmem>>, %arg4: memref<16x16xf32, #tpu.memory_space<vmem>>, %arg5: memref<16x72xbf16, #tpu.memory_space<vmem>>, %arg6: memref<16x144xbf16, #tpu.memory_space<vmem>>, %arg7: memref<16x32xf32, #tpu.memory_space<vmem>>, %arg8: memref<16x8xf32, #tpu.memory_space<vmem>>, %arg9: memref<16x8xf32, #tpu.memory_space<vmem>>, %arg10: memref<1x16x256xf32, #tpu.memory_space<vmem>>, %arg11: memref<8x290xbf16, #tpu.memory_space<vmem>>, %arg12: memref<16x290xbf16, #tpu.memory_space<vmem>>) attributes {dimension_semantics = [#tpu.dimension_semantics<parallel>], iteration_bounds = array<i64: 2>, scalar_prefetch = 0 : i64, scratch_operands = 2 : i64, tpu.core_type = #tpu.core_type<tc>, window_params = [{transform_indices = @transform_0, window_bounds = array<i64: 1, 8, 256>}, {transform_indices = @transform_1, window_bounds = array<i64: 1, 1, 32>}, {pipeline_mode = #tpu.pipeline_mode<synchronous>, transform_indices = @transform_2, window_bounds = array<i64: 2, 256>}, {pipeline_mode = #tpu.pipeline_mode<synchronous>, transform_indices = @transform_3, window_bounds = array<i64: 16, 16>}, {pipeline_mode = #tpu.pipeline_mode<synchronous>, transform_indices = @transform_4, window_bounds = array<i64: 16, 72>}, {pipeline_mode = #tpu.pipeline_mode<synchronous>, transform_indices = @transform_5, window_bounds = array<i64: 16, 144>}, {pipeline_mode = #tpu.pipeline_mode<synchronous>, transform_indices = @transform_6, window_bounds = array<i64: 16, 32>}, {pipeline_mode = #tpu.pipeline_mode<synchronous>, transform_indices = @transform_7, window_bounds = array<i64: 16, 8>}, {pipeline_mode = #tpu.pipeline_mode<synchronous>, transform_indices = @transform_8, window_bounds = array<i64: 16, 8>}, {transform_indices = @transform_9, window_bounds = array<i64: 1, 16, 256>}]} {
    %c0 = arith.constant 0 : index
    %c0_0 = arith.constant 0 : index
    %0 = vector.load %arg8[%c0, %c0_0] : memref<16x8xf32, #tpu.memory_space<vmem>>, vector<16x1xf32>
    %c0_1 = arith.constant 0 : index
    %c1 = arith.constant 1 : index
    %1 = vector.load %arg8[%c0_1, %c1] : memref<16x8xf32, #tpu.memory_space<vmem>>, vector<16x1xf32>
    %c0_2 = arith.constant 0 : index
    %c2 = arith.constant 2 : index
    %2 = vector.load %arg8[%c0_2, %c2] : memref<16x8xf32, #tpu.memory_space<vmem>>, vector<16x1xf32>
    %c0_3 = arith.constant 0 : index
    %c3 = arith.constant 3 : index
    %3 = vector.load %arg8[%c0_3, %c3] : memref<16x8xf32, #tpu.memory_space<vmem>>, vector<16x1xf32>
    %c0_4 = arith.constant 0 : index
    %c4 = arith.constant 4 : index
    %4 = vector.load %arg8[%c0_4, %c4] : memref<16x8xf32, #tpu.memory_space<vmem>>, vector<16x1xf32>
    %c0_5 = arith.constant 0 : index
    %c5 = arith.constant 5 : index
    %5 = vector.load %arg8[%c0_5, %c5] : memref<16x8xf32, #tpu.memory_space<vmem>>, vector<16x1xf32>
    %c0_6 = arith.constant 0 : index
    %c6 = arith.constant 6 : index
    %6 = vector.load %arg8[%c0_6, %c6] : memref<16x8xf32, #tpu.memory_space<vmem>>, vector<16x1xf32>
    %c0_7 = arith.constant 0 : index
    %c0_8 = arith.constant 0 : index
    %7 = vector.load %arg3[%c0_7, %c0_8] : memref<2x256xf32, #tpu.memory_space<vmem>>, vector<1x256xf32>
    %c1_9 = arith.constant 1 : index
    %c0_10 = arith.constant 0 : index
    %8 = vector.load %arg3[%c1_9, %c0_10] : memref<2x256xf32, #tpu.memory_space<vmem>>, vector<1x256xf32>
    %cst = arith.constant 0.000000e+00 : bf16
    %9 = vector.broadcast %cst : bf16 to vector<8x17xbf16>
    %c0_11 = arith.constant 0 : index
    %c0_12 = arith.constant 0 : index
    %10 = vector.load %arg11[%c0_11, %c0_12] : memref<8x290xbf16, #tpu.memory_space<vmem>>, vector<8x17xbf16>
    tpu.vector_store %arg11[%c0_11, %c0_12], %9 {strides = array<i32>} : memref<8x290xbf16, #tpu.memory_space<vmem>>, vector<8x17xbf16>,
    %c0_13 = arith.constant 0 : index
    %c273 = arith.constant 273 : index
    %11 = vector.load %arg11[%c0_13, %c273] : memref<8x290xbf16, #tpu.memory_space<vmem>>, vector<8x17xbf16>
    tpu.vector_store %arg11[%c0_13, %c273], %9 {strides = array<i32>} : memref<8x290xbf16, #tpu.memory_space<vmem>>, vector<8x17xbf16>,
    %cst_14 = arith.constant 0.000000e+00 : bf16
    %12 = vector.broadcast %cst_14 : bf16 to vector<16x17xbf16>
    %c0_15 = arith.constant 0 : index
    %c0_16 = arith.constant 0 : index
    %13 = vector.load %arg12[%c0_15, %c0_16] : memref<16x290xbf16, #tpu.memory_space<vmem>>, vector<16x17xbf16>
    tpu.vector_store %arg12[%c0_15, %c0_16], %12 {strides = array<i32>} : memref<16x290xbf16, #tpu.memory_space<vmem>>, vector<16x17xbf16>,
    %c0_17 = arith.constant 0 : index
    %c273_18 = arith.constant 273 : index
    %14 = vector.load %arg12[%c0_17, %c273_18] : memref<16x290xbf16, #tpu.memory_space<vmem>>, vector<16x17xbf16>
    tpu.vector_store %arg12[%c0_17, %c273_18], %12 {strides = array<i32>} : memref<16x290xbf16, #tpu.memory_space<vmem>>, vector<16x17xbf16>,
    %c0_19 = arith.constant 0 : index
    %c0_20 = arith.constant 0 : index
    %c0_21 = arith.constant 0 : index
    %15 = vector.load %arg1[%c0_19, %c0_20, %c0_21] : memref<1x8x256xf32, #tpu.memory_space<vmem>>, vector<1x8x256xf32>
    %16 = vector.shape_cast %15 : vector<1x8x256xf32> to vector<8x256xf32>
    %17 = arith.truncf %16 : vector<8x256xf32> to vector<8x256xbf16>
    %c0_22 = arith.constant 0 : index
    %c17 = arith.constant 17 : index
    %18 = vector.load %arg11[%c0_22, %c17] : memref<8x290xbf16, #tpu.memory_space<vmem>>, vector<8x256xbf16>
    tpu.vector_store %arg11[%c0_22, %c17], %17 {strides = array<i32>} : memref<8x290xbf16, #tpu.memory_space<vmem>>, vector<8x256xbf16>,
    %19 = vector.shape_cast %7 : vector<1x256xf32> to vector<1x256xf32>
    %20 = vector.broadcast %19 : vector<1x256xf32> to vector<8x256xf32>
    %21 = vector.shape_cast %8 : vector<1x256xf32> to vector<1x256xf32>
    %22 = vector.broadcast %21 : vector<1x256xf32> to vector<8x256xf32>
    %c0_23 = arith.constant 0 : index
    %c0_24 = arith.constant 0 : index
    %23 = vector.load %arg11[%c0_23, %c0_24] : memref<8x290xbf16, #tpu.memory_space<vmem>>, vector<8x256xbf16>
    %24 = arith.extf %23 : vector<8x256xbf16> to vector<8x256xf32>
    %25 = arith.mulf %24, %20 : vector<8x256xf32>
    %c0_25 = arith.constant 0 : index
    %c1_26 = arith.constant 1 : index
    %26 = vector.load %arg11[%c0_25, %c1_26] : memref<8x290xbf16, #tpu.memory_space<vmem>>, vector<8x256xbf16>
    %27 = arith.extf %26 : vector<8x256xbf16> to vector<8x256xf32>
    %c0_27 = arith.constant 0 : index
    %c2_28 = arith.constant 2 : index
    %28 = vector.load %arg11[%c0_27, %c2_28] : memref<8x290xbf16, #tpu.memory_space<vmem>>, vector<8x256xbf16>
    %29 = arith.extf %28 : vector<8x256xbf16> to vector<8x256xf32>
    %30 = arith.mulf %29, %22 : vector<8x256xf32>
    %c0_29 = arith.constant 0 : index
    %c16 = arith.constant 16 : index
    %31 = vector.load %arg11[%c0_29, %c16] : memref<8x290xbf16, #tpu.memory_space<vmem>>, vector<8x256xbf16>
    %32 = arith.extf %31 : vector<8x256xbf16> to vector<8x256xf32>
    %33 = arith.mulf %32, %20 : vector<8x256xf32>
    %c0_30 = arith.constant 0 : index
    %c17_31 = arith.constant 17 : index
    %34 = vector.load %arg11[%c0_30, %c17_31] : memref<8x290xbf16, #tpu.memory_space<vmem>>, vector<8x256xbf16>
    %35 = arith.extf %34 : vector<8x256xbf16> to vector<8x256xf32>
    %c0_32 = arith.constant 0 : index
    %c18 = arith.constant 18 : index
    %36 = vector.load %arg11[%c0_32, %c18] : memref<8x290xbf16, #tpu.memory_space<vmem>>, vector<8x256xbf16>
    %37 = arith.extf %36 : vector<8x256xbf16> to vector<8x256xf32>
    %38 = arith.mulf %37, %22 : vector<8x256xf32>
    %c0_33 = arith.constant 0 : index
    %c32 = arith.constant 32 : index
    %39 = vector.load %arg11[%c0_33, %c32] : memref<8x290xbf16, #tpu.memory_space<vmem>>, vector<8x256xbf16>
    %40 = arith.extf %39 : vector<8x256xbf16> to vector<8x256xf32>
    %41 = arith.mulf %40, %20 : vector<8x256xf32>
    %c0_34 = arith.constant 0 : index
    %c33 = arith.constant 33 : index
    %42 = vector.load %arg11[%c0_34, %c33] : memref<8x290xbf16, #tpu.memory_space<vmem>>, vector<8x256xbf16>
    %43 = arith.extf %42 : vector<8x256xbf16> to vector<8x256xf32>
    %c0_35 = arith.constant 0 : index
    %c34 = arith.constant 34 : index
    %44 = vector.load %arg11[%c0_35, %c34] : memref<8x290xbf16, #tpu.memory_space<vmem>>, vector<8x256xbf16>
    %45 = arith.extf %44 : vector<8x256xbf16> to vector<8x256xf32>
    %46 = arith.mulf %45, %22 : vector<8x256xf32>
    %47 = tpu.concatenate %25, %27, %30, %33, %35, %38, %41, %43, %46 in 0 : vector<8x256xf32>, vector<8x256xf32>, vector<8x256xf32>, vector<8x256xf32>, vector<8x256xf32>, vector<8x256xf32>, vector<8x256xf32>, vector<8x256xf32>, vector<8x256xf32> -> vector<72x256xf32>
    %48 = arith.truncf %47 : vector<72x256xf32> to vector<72x256xbf16>
    %c0_36 = arith.constant 0 : index
    %c0_37 = arith.constant 0 : index
    %49 = vector.load %arg5[%c0_36, %c0_37] : memref<16x72xbf16, #tpu.memory_space<vmem>>, vector<16x72xbf16>
    %cst_38 = arith.constant dense<0.000000e+00> : vector<16x256xf32>
    %50 = tpu.matmul %49, %48, %cst_38 {dimension_numbers = #tpu.dot_dimension_numbers<[1], [0], [0], [1], [0, 0, 1, 1], [], []>} : vector<16x72xbf16>, vector<72x256xbf16>, vector<16x256xf32> -> vector<16x256xf32>
    %51 = vector.broadcast %0 : vector<16x1xf32> to vector<16x256xf32>
    %52 = arith.addf %50, %51 : vector<16x256xf32>
    %c0_39 = arith.constant 0 : index
    %c0_40 = arith.constant 0 : index
    %53 = vector.load %arg4[%c0_39, %c0_40] : memref<16x16xf32, #tpu.memory_space<vmem>>, vector<16x16xf32>
    %cst_41 = arith.constant dense<0.000000e+00> : vector<16xf32>
    %54 = vector.multi_reduction <add>, %52, %cst_41 [1] : vector<16x256xf32> to vector<16xf32>
    %55 = vector.shape_cast %54 : vector<16xf32> to vector<16x1xf32>
    %cst_42 = arith.constant dense<0.000000e+00> : vector<16x1xf32>
    %56 = tpu.matmul %53, %55, %cst_42 {dimension_numbers = #tpu.dot_dimension_numbers<[1], [0], [0], [1], [0, 0, 1, 1], [], []>} : vector<16x16xf32>, vector<16x1xf32>, vector<16x1xf32> -> vector<16x1xf32>
    %57 = vector.broadcast %56 : vector<16x1xf32> to vector<16x256xf32>
    %58 = arith.subf %52, %57 : vector<16x256xf32>
    %c0_43 = arith.constant 0 : index
    %c0_44 = arith.constant 0 : index
    %59 = vector.load %arg4[%c0_43, %c0_44] : memref<16x16xf32, #tpu.memory_space<vmem>>, vector<16x16xf32>
    %60 = arith.mulf %58, %58 : vector<16x256xf32>
    %cst_45 = arith.constant dense<0.000000e+00> : vector<16xf32>
    %61 = vector.multi_reduction <add>, %60, %cst_45 [1] : vector<16x256xf32> to vector<16xf32>
    %62 = vector.shape_cast %61 : vector<16xf32> to vector<16x1xf32>
    %cst_46 = arith.constant dense<0.000000e+00> : vector<16x1xf32>
    %63 = tpu.matmul %59, %62, %cst_46 {dimension_numbers = #tpu.dot_dimension_numbers<[1], [0], [0], [1], [0, 0, 1, 1], [], []>} : vector<16x16xf32>, vector<16x1xf32>, vector<16x1xf32> -> vector<16x1xf32>
    %cst_47 = arith.constant 0.000000e+00 : f32
    %64 = vector.broadcast %cst_47 : f32 to vector<16x1xf32>
    %65 = arith.maximumf %63, %64 : vector<16x1xf32>
    %cst_48 = arith.constant 9.99999974E-6 : f32
    %66 = vector.broadcast %cst_48 : f32 to vector<16x1xf32>
    %67 = arith.addf %65, %66 : vector<16x1xf32>
    %68 = math.rsqrt %67 : vector<16x1xf32>
    %69 = vector.broadcast %68 : vector<16x1xf32> to vector<16x256xf32>
    %70 = arith.mulf %58, %69 : vector<16x256xf32>
    %71 = vector.broadcast %1 : vector<16x1xf32> to vector<16x256xf32>
    %72 = arith.mulf %70, %71 : vector<16x256xf32>
    %73 = vector.broadcast %2 : vector<16x1xf32> to vector<16x256xf32>
    %74 = arith.addf %72, %73 : vector<16x256xf32>
    %75 = arith.negf %74 : vector<16x256xf32>
    %76 = math.exp %75 : vector<16x256xf32>
    %cst_49 = arith.constant 1.000000e+00 : f32
    %77 = vector.broadcast %cst_49 : f32 to vector<16x256xf32>
    %78 = arith.addf %77, %76 : vector<16x256xf32>
    %79 = arith.divf %77, %78 : vector<16x256xf32>
    %80 = arith.mulf %74, %79 : vector<16x256xf32>
    %c0_50 = arith.constant 0 : index
    %c0_51 = arith.constant 0 : index
    %81 = vector.load %arg7[%c0_50, %c0_51] : memref<16x32xf32, #tpu.memory_space<vmem>>, vector<16x32xf32>
    %c0_52 = arith.constant 0 : index
    %c0_53 = arith.constant 0 : index
    %c0_54 = arith.constant 0 : index
    %82 = vector.load %arg2[%c0_52, %c0_53, %c0_54] : memref<1x1x32xf32, #tpu.memory_space<vmem>>, vector<1x1x32xf32>
    %83 = vector.shape_cast %82 : vector<1x1x32xf32> to vector<1x32xf32>
    %84 = vector.broadcast %83 : vector<1x32xf32> to vector<16x32xf32>
    %85 = arith.mulf %81, %84 : vector<16x32xf32>
    %cst_55 = arith.constant dense<0.000000e+00> : vector<16xf32>
    %86 = vector.multi_reduction <add>, %85, %cst_55 [1] : vector<16x32xf32> to vector<16xf32>
    %87 = vector.shape_cast %86 : vector<16xf32> to vector<16x1xf32>
    %88 = arith.addf %87, %3 : vector<16x1xf32>
    %89 = vector.broadcast %88 : vector<16x1xf32> to vector<16x256xf32>
    %90 = arith.addf %80, %89 : vector<16x256xf32>
    %91 = arith.truncf %90 : vector<16x256xf32> to vector<16x256xbf16>
    %c0_56 = arith.constant 0 : index
    %c17_57 = arith.constant 17 : index
    %92 = vector.load %arg12[%c0_56, %c17_57] : memref<16x290xbf16, #tpu.memory_space<vmem>>, vector<16x256xbf16>
    tpu.vector_store %arg12[%c0_56, %c17_57], %91 {strides = array<i32>} : memref<16x290xbf16, #tpu.memory_space<vmem>>, vector<16x256xbf16>,
    %93 = arith.truncf %7 : vector<1x256xf32> to vector<1x256xbf16>
    %94 = vector.shape_cast %93 : vector<1x256xbf16> to vector<1x256xbf16>
    %95 = vector.broadcast %94 : vector<1x256xbf16> to vector<16x256xbf16>
    %96 = arith.truncf %8 : vector<1x256xf32> to vector<1x256xbf16>
    %97 = vector.shape_cast %96 : vector<1x256xbf16> to vector<1x256xbf16>
    %98 = vector.broadcast %97 : vector<1x256xbf16> to vector<16x256xbf16>
    %c0_58 = arith.constant 0 : index
    %c0_59 = arith.constant 0 : index
    %99 = vector.load %arg12[%c0_58, %c0_59] : memref<16x290xbf16, #tpu.memory_space<vmem>>, vector<16x256xbf16>
    %100 = arith.mulf %99, %95 : vector<16x256xbf16>
    %c0_60 = arith.constant 0 : index
    %c1_61 = arith.constant 1 : index
    %101 = vector.load %arg12[%c0_60, %c1_61] : memref<16x290xbf16, #tpu.memory_space<vmem>>, vector<16x256xbf16>
    %c0_62 = arith.constant 0 : index
    %c2_63 = arith.constant 2 : index
    %102 = vector.load %arg12[%c0_62, %c2_63] : memref<16x290xbf16, #tpu.memory_space<vmem>>, vector<16x256xbf16>
    %103 = arith.mulf %102, %98 : vector<16x256xbf16>
    %c0_64 = arith.constant 0 : index
    %c16_65 = arith.constant 16 : index
    %104 = vector.load %arg12[%c0_64, %c16_65] : memref<16x290xbf16, #tpu.memory_space<vmem>>, vector<16x256xbf16>
    %105 = arith.mulf %104, %95 : vector<16x256xbf16>
    %c0_66 = arith.constant 0 : index
    %c17_67 = arith.constant 17 : index
    %106 = vector.load %arg12[%c0_66, %c17_67] : memref<16x290xbf16, #tpu.memory_space<vmem>>, vector<16x256xbf16>
    %c0_68 = arith.constant 0 : index
    %c18_69 = arith.constant 18 : index
    %107 = vector.load %arg12[%c0_68, %c18_69] : memref<16x290xbf16, #tpu.memory_space<vmem>>, vector<16x256xbf16>
    %108 = arith.mulf %107, %98 : vector<16x256xbf16>
    %c0_70 = arith.constant 0 : index
    %c32_71 = arith.constant 32 : index
    %109 = vector.load %arg12[%c0_70, %c32_71] : memref<16x290xbf16, #tpu.memory_space<vmem>>, vector<16x256xbf16>
    %110 = arith.mulf %109, %95 : vector<16x256xbf16>
    %c0_72 = arith.constant 0 : index
    %c33_73 = arith.constant 33 : index
    %111 = vector.load %arg12[%c0_72, %c33_73] : memref<16x290xbf16, #tpu.memory_space<vmem>>, vector<16x256xbf16>
    %c0_74 = arith.constant 0 : index
    %c34_75 = arith.constant 34 : index
    %112 = vector.load %arg12[%c0_74, %c34_75] : memref<16x290xbf16, #tpu.memory_space<vmem>>, vector<16x256xbf16>
    %113 = arith.mulf %112, %98 : vector<16x256xbf16>
    %114 = tpu.concatenate %100, %101, %103, %105, %106, %108, %110, %111, %113 in 0 : vector<16x256xbf16>, vector<16x256xbf16>, vector<16x256xbf16>, vector<16x256xbf16>, vector<16x256xbf16>, vector<16x256xbf16>, vector<16x256xbf16>, vector<16x256xbf16>, vector<16x256xbf16> -> vector<144x256xbf16>
    %c0_76 = arith.constant 0 : index
    %c0_77 = arith.constant 0 : index
    %115 = vector.load %arg6[%c0_76, %c0_77] : memref<16x144xbf16, #tpu.memory_space<vmem>>, vector<16x144xbf16>
    %cst_78 = arith.constant dense<0.000000e+00> : vector<16x256xf32>
    %116 = tpu.matmul %115, %114, %cst_78 {dimension_numbers = #tpu.dot_dimension_numbers<[1], [0], [0], [1], [0, 0, 1, 1], [], []>} : vector<16x144xbf16>, vector<144x256xbf16>, vector<16x256xf32> -> vector<16x256xf32>
    %117 = vector.broadcast %4 : vector<16x1xf32> to vector<16x256xf32>
    %118 = arith.addf %116, %117 : vector<16x256xf32>
    %c0_79 = arith.constant 0 : index
    %c0_80 = arith.constant 0 : index
    %119 = vector.load %arg4[%c0_79, %c0_80] : memref<16x16xf32, #tpu.memory_space<vmem>>, vector<16x16xf32>
    %cst_81 = arith.constant dense<0.000000e+00> : vector<16xf32>
    %120 = vector.multi_reduction <add>, %118, %cst_81 [1] : vector<16x256xf32> to vector<16xf32>
    %121 = vector.shape_cast %120 : vector<16xf32> to vector<16x1xf32>
    %cst_82 = arith.constant dense<0.000000e+00> : vector<16x1xf32>
    %122 = tpu.matmul %119, %121, %cst_82 {dimension_numbers = #tpu.dot_dimension_numbers<[1], [0], [0], [1], [0, 0, 1, 1], [], []>} : vector<16x16xf32>, vector<16x1xf32>, vector<16x1xf32> -> vector<16x1xf32>
    %123 = vector.broadcast %122 : vector<16x1xf32> to vector<16x256xf32>
    %124 = arith.subf %118, %123 : vector<16x256xf32>
    %c0_83 = arith.constant 0 : index
    %c0_84 = arith.constant 0 : index
    %125 = vector.load %arg4[%c0_83, %c0_84] : memref<16x16xf32, #tpu.memory_space<vmem>>, vector<16x16xf32>
    %126 = arith.mulf %124, %124 : vector<16x256xf32>
    %cst_85 = arith.constant dense<0.000000e+00> : vector<16xf32>
    %127 = vector.multi_reduction <add>, %126, %cst_85 [1] : vector<16x256xf32> to vector<16xf32>
    %128 = vector.shape_cast %127 : vector<16xf32> to vector<16x1xf32>
    %cst_86 = arith.constant dense<0.000000e+00> : vector<16x1xf32>
    %129 = tpu.matmul %125, %128, %cst_86 {dimension_numbers = #tpu.dot_dimension_numbers<[1], [0], [0], [1], [0, 0, 1, 1], [], []>} : vector<16x16xf32>, vector<16x1xf32>, vector<16x1xf32> -> vector<16x1xf32>
    %cst_87 = arith.constant 0.000000e+00 : f32
    %130 = vector.broadcast %cst_87 : f32 to vector<16x1xf32>
    %131 = arith.maximumf %129, %130 : vector<16x1xf32>
    %cst_88 = arith.constant 9.99999974E-6 : f32
    %132 = vector.broadcast %cst_88 : f32 to vector<16x1xf32>
    %133 = arith.addf %131, %132 : vector<16x1xf32>
    %134 = math.rsqrt %133 : vector<16x1xf32>
    %135 = vector.broadcast %134 : vector<16x1xf32> to vector<16x256xf32>
    %136 = arith.mulf %124, %135 : vector<16x256xf32>
    %137 = vector.broadcast %5 : vector<16x1xf32> to vector<16x256xf32>
    %138 = arith.mulf %136, %137 : vector<16x256xf32>
    %139 = vector.broadcast %6 : vector<16x1xf32> to vector<16x256xf32>
    %140 = arith.addf %138, %139 : vector<16x256xf32>
    %141 = arith.negf %140 : vector<16x256xf32>
    %142 = math.exp %141 : vector<16x256xf32>
    %cst_89 = arith.constant 1.000000e+00 : f32
    %143 = vector.broadcast %cst_89 : f32 to vector<16x256xf32>
    %144 = arith.addf %143, %142 : vector<16x256xf32>
    %145 = arith.divf %143, %144 : vector<16x256xf32>
    %146 = arith.mulf %140, %145 : vector<16x256xf32>
    %c0_90 = arith.constant 0 : index
    %c0_91 = arith.constant 0 : index
    %147 = vector.load %arg9[%c0_90, %c0_91] : memref<16x8xf32, #tpu.memory_space<vmem>>, vector<16x8xf32>
    %cst_92 = arith.constant dense<0.000000e+00> : vector<16x256xf32>
    %148 = tpu.matmul %147, %16, %cst_92 {dimension_numbers = #tpu.dot_dimension_numbers<[1], [0], [0], [1], [0, 0, 1, 1], [], []>} : vector<16x8xf32>, vector<8x256xf32>, vector<16x256xf32> -> vector<16x256xf32>
    %c0_93 = arith.constant 0 : index
    %c7 = arith.constant 7 : index
    %149 = vector.load %arg8[%c0_93, %c7] : memref<16x8xf32, #tpu.memory_space<vmem>>, vector<16x1xf32>
    %150 = vector.broadcast %149 : vector<16x1xf32> to vector<16x256xf32>
    %151 = arith.addf %148, %150 : vector<16x256xf32>
    %152 = arith.addf %146, %151 : vector<16x256xf32>
    %c0_94 = arith.constant 0 : index
    %c0_95 = arith.constant 0 : index
    %c0_96 = arith.constant 0 : index
    %153 = vector.load %arg10[%c0_94, %c0_95, %c0_96] : memref<1x16x256xf32, #tpu.memory_space<vmem>>, vector<1x16x256xf32>
    %154 = vector.shape_cast %153 : vector<1x16x256xf32> to vector<16x256xf32>
    %155 = vector.shape_cast %152 : vector<16x256xf32> to vector<1x16x256xf32>
    tpu.vector_store %arg10[%c0_94, %c0_95, %c0_96], %155 {strides = array<i32>} : memref<1x16x256xf32, #tpu.memory_space<vmem>>, vector<1x16x256xf32>,
    return
  }
  func.func @transform_0(%arg0: i32) -> (i32, i32, i32) {
    %c0_i32 = arith.constant 0 : i32
    %c0_i32_0 = arith.constant 0 : i32
    %c0_i32_1 = arith.constant 0 : i32
    return %arg0, %c0_i32, %c0_i32_0 : i32, i32, i32
  }
  func.func @transform_1(%arg0: i32) -> (i32, i32, i32) {
    %c0_i32 = arith.constant 0 : i32
    %c0_i32_0 = arith.constant 0 : i32
    %c0_i32_1 = arith.constant 0 : i32
    return %arg0, %c0_i32, %c0_i32_0 : i32, i32, i32
  }
  func.func @transform_2(%arg0: i32) -> (i32, i32) {
    %c0_i32 = arith.constant 0 : i32
    %c0_i32_0 = arith.constant 0 : i32
    %c0_i32_1 = arith.constant 0 : i32
    return %c0_i32, %c0_i32_0 : i32, i32
  }
  func.func @transform_3(%arg0: i32) -> (i32, i32) {
    %c0_i32 = arith.constant 0 : i32
    %c0_i32_0 = arith.constant 0 : i32
    %c0_i32_1 = arith.constant 0 : i32
    return %c0_i32, %c0_i32_0 : i32, i32
  }
  func.func @transform_4(%arg0: i32) -> (i32, i32) {
    %c0_i32 = arith.constant 0 : i32
    %c0_i32_0 = arith.constant 0 : i32
    %c0_i32_1 = arith.constant 0 : i32
    return %c0_i32, %c0_i32_0 : i32, i32
  }
  func.func @transform_5(%arg0: i32) -> (i32, i32) {
    %c0_i32 = arith.constant 0 : i32
    %c0_i32_0 = arith.constant 0 : i32
    %c0_i32_1 = arith.constant 0 : i32
    return %c0_i32, %c0_i32_0 : i32, i32
  }
  func.func @transform_6(%arg0: i32) -> (i32, i32) {
    %c0_i32 = arith.constant 0 : i32
    %c0_i32_0 = arith.constant 0 : i32
    %c0_i32_1 = arith.constant 0 : i32
    return %c0_i32, %c0_i32_0 : i32, i32
  }
  func.func @transform_7(%arg0: i32) -> (i32, i32) {
    %c0_i32 = arith.constant 0 : i32
    %c0_i32_0 = arith.constant 0 : i32
    %c0_i32_1 = arith.constant 0 : i32
    return %c0_i32, %c0_i32_0 : i32, i32
  }
  func.func @transform_8(%arg0: i32) -> (i32, i32) {
    %c0_i32 = arith.constant 0 : i32
    %c0_i32_0 = arith.constant 0 : i32
    %c0_i32_1 = arith.constant 0 : i32
    return %c0_i32, %c0_i32_0 : i32, i32
  }
  func.func @transform_9(%arg0: i32) -> (i32, i32, i32) {
    %c0_i32 = arith.constant 0 : i32
    %c0_i32_0 = arith.constant 0 : i32
    %c0_i32_1 = arith.constant 0 : i32
    return %arg0, %c0_i32, %c0_i32_0 : i32, i32, i32
  }
}

</mosaic_0001>

<bundles_post_ra>
// kernel: tpu_custom_call.1
= control target key start
LH: loop header
LB: loop body
LE: loop exit
PB: predicated region body
PF: predicated region fallthrough
CT: control target
= control target key end

     0   :  { %14 = vsyncpa [#allocation5], 0  ;;  %s2838_s0 = inlined_call_operand.vmem [shape: f32[2,8,256], index: 0, kind: input, shape index: {}]   ;;  %s2839_s1 = inlined_call_operand.vmem [shape: f32[2,1,32], index: 1, kind: input, shape index: {}]   ;;  %s2840_s2 = inlined_call_operand.hbm [shape: f32[2,256], index: 2, kind: input, shape index: {}]   ;;  %s2841_s3 = inlined_call_operand.vmem [shape: f32[16,16], index: 3, kind: input, shape index: {}]   ;;  %s2842_s4 = inlined_call_operand.hbm [shape: bf16[16,72], index: 4, kind: input, shape index: {}]   ;;  %s2843_s5 = inlined_call_operand.vmem [shape: bf16[16,144], index: 5, kind: input, shape index: {}]   ;;  %s2844_s6 = inlined_call_operand.hbm [shape: f32[16,32], index: 6, kind: input, shape index: {}]   ;;  %s2845_s7 = inlined_call_operand.vmem [shape: f32[16,8], index: 7, kind: input, shape index: {}]   ;;  %s2846_s8 = inlined_call_operand.vmem [shape: f32[16,8], index: 8, kind: input, shape index: {}]   ;;  %s2847_s9 = inlined_call_operand.hbm [shape: f32[2,16,256], index: 9, kind: output, shape index: {}]  }
   0x1   :  { %15 = vsyncpa [#allocation8], 0 }
   0x2   :  { %16 = vsyncpa [#allocation6], 0 }
   0x3   :  { %18 = vsyncpa [#allocation6 + $0x1], 0  ;;  %s2309_s30 = smov 0   ;;  %s2311_s10 = smov 0  }
   0x4   :  { %s2313_s11 = smov 0   ;;  %s2315_s12 = smov 0  }
   0x5 LB: > { %2862 = sst [smem:[#allocation14_spill]] %s2213_s30  ;;  %s2330_s13 = sadd.s32 4294967295, %s2225_s12   ;;  %s2225_s12 = sphi %s2315_s12, %s2884_s12   ;;  %s2221_s11 = sphi %s2313_s11, %s2886_s11   ;;  %s2217_s10 = sphi %s2311_s10, %s2888_s10   ;;  %s2213_s30 = sphi %s2309_s30, %s2887_s30  }
   0x6   : > { %2863 = sst [smem:[#allocation15_spill]] %s2221_s11  ;;  %s1761_s14 = sadd.s32 4294967294, %s2225_s12  }
   0x7   : > { %s2334_s15 = sadd.s32 1, %s2225_s12   ;;  %s230_s16 = sadd.s32 1, %s2221_s11 }
   0x8   : > { %2864 = sst [smem:[#allocation16_spill]] %s2334_s15  ;;  %s227_s17 = ssub.s32 %s2225_s12, %s2334_s15 }
   0x9   : > { %p240_p0 = scmp.ne.s32.totalorder %s2221_s11, %s2217_s10  ;;  %p228_p1 = scmp.eq.s32.totalorder %s227_s17, 0 }
   0xa   : > { %p241_p2 = scmp.eq.s32.totalorder %s2330_s13, 1  ;;  %p246_p3 = scmp.ne.s32.totalorder %s2217_s10, %s2213_s30 }
   0xb   : > { %p247_p4 = scmp.eq.s32.totalorder %s1761_s14, 1  ;;  %p1762_p7 = scmp.ge.s32.totalorder %s2225_s12, 1 }
   0xc   : > { %s2345_s18 = scalar_select %p228_p1, %s2221_s11, %s230_s16  }
   0xd   : > { %p2347_p5 = por %p241_p2, %p240_p0  ;;  %p2351_p6 = por %p247_p4, %p246_p3 }
   0xe   : > { %2865 = sst [smem:[#allocation17_spill]] %s2345_s18  ;;  %p254_p8 = scmp.lt.s32.totalorder %s2225_s12, 3 }
   0xf   : > { %s2866_s19 = scalar_select %p2347_p5, 1, 0 }
  0x10   : > { %s2867_s20 = scalar_select %p2351_p6, 1, 0 }
  0x11   : > { %p2848_p9 = scmp.eq.s32.totalorder %s2330_s13, 0  ;;  %p2358_p10 = pnand %p1762_p7, %p254_p8 }
  0x12   : > { %2868 = sst [smem:[#allocation18_spill]] %s2867_s20  ;;  %s2227_s22 = smov [#allocation7]  }
  0x13   : > { %s2869_s21 = scalar_select %p2358_p10, 1, 0 }
  0x14   : > { %s280_s23 = sshll.u32 %s2227_s22, 4  ;;  %p1882_p11 = pneg %p2358_p10  ;;  %s2364_s23 = int_to_ptr.vmem [resolvable:$true] %s280_s23 }
  0x15   : > { %s2228_s25 = smov [#allocation4]   ;;  %s2229_s27 = smov [#allocation9]  }
  0x16   : > { %p2368_p12 = pnand %p2848_p9, %p1882_p11  ;;  %s267_s26 = sshll.u32 %s2228_s25, 4  ;;  %s2372_s26 = int_to_ptr.vmem [resolvable:$true] %s267_s26 }
  0x17   : > { %s2374_s28 = sshll.u32 %s2229_s27, 4  ;;  %s2071_s16 = scalar_lea.hbm %s2842_s4, 128  ;;  %s297_s28 = int_to_ptr.vmem [resolvable:$true] %s2374_s28 }
  0x18   : > { %p2072_p13 = scmp.ne.s32.totalorder %s2842_s4, %s2071_s16  ;;  %p2384_p0 = pneg %p2368_p12 }
  0x19   : > { %p2078_p3 = scmp.lt.u32.totalorder %s2071_s16, %s2842_s4 }
  0x1a   : > { %p2074_p1 = pnand %p2384_p0, %p2072_p13 }
  0x1c   : > { %p2075_p2 = pneg %p2074_p1 }
  0x1e   : > { %p2080_p4 = pnand %p2078_p3, %p2075_p2 }
  0x20   : > { %2083 = shalt.err (!%p2080_p4)
}
  0x21   : > { %s2084_s29 = scalar_lea.vmem %s2364_s23, 128  ;;  %p2092_p9 = scmp.lt.s32.totalorder %s2364_s23, %s2364_s23 }
  0x22   : > { %p2085_p7 = scmp.ne.s32.totalorder %s2364_s23, %s2084_s29  ;;  %p2093_p6 = scmp.lt.s32.totalorder %s2084_s29, %s2084_s29 }
  0x24   : > { %p2087_p8 = pnand %p2085_p7, %p2384_p0  ;;  %p2094_p13 = por %p2093_p6, %p2092_p9 }
  0x26   : > { %p2088_p11 = pneg %p2087_p8 }
  0x28   : > { %p2095_p1 = pnand %p2094_p13, %p2088_p11 }
  0x2a   : > { %2098 = shalt.err (!%p2095_p1)
}
  0x2b   : > { %s2230_s14 = smov 64   ;;  %s2231_s16 = smov 4  }
  0x2c   : > { %1888 = dma.hbm_to_vmem [thread:$0]  (!%p2368_p12), %s2842_s4, 128, %s2364_s23, [#allocation8], %s2230_s14, %s2230_s14, %s2231_s16  }
  0x2d   : > { %s2099_s11 = scalar_lea.hbm %s2840_s2, 64 }
  0x2e   : > { %p2100_p6 = scmp.ne.s32.totalorder %s2840_s2, %s2099_s11  ;;  %p2106_p3 = scmp.lt.u32.totalorder %s2099_s11, %s2840_s2 }
  0x30   : > { %p2102_p9 = pnand %p2100_p6, %p2384_p0 }
  0x32   : > { %p2103_p2 = pneg %p2102_p9 }
  0x34   : > { %p2108_p4 = pnand %p2106_p3, %p2103_p2 }
  0x36   : > { %2111 = shalt.err (!%p2108_p4)
}
  0x37   : > { %s2112_s23 = scalar_lea.vmem %s2372_s26, 64  ;;  %p2120_p13 = scmp.lt.s32.totalorder %s2372_s26, %s2372_s26 }
  0x38   : > { %p2113_p7 = scmp.ne.s32.totalorder %s2372_s26, %s2112_s23  ;;  %p2121_p1 = scmp.lt.s32.totalorder %s2112_s23, %s2112_s23 }
  0x3a   : > { %p2115_p8 = pnand %p2113_p7, %p2384_p0  ;;  %p2122_p6 = por %p2121_p1, %p2120_p13 }
  0x3c   : > { %p2116_p11 = pneg %p2115_p8 }
  0x3e   : > { %p2123_p9 = pnand %p2122_p6, %p2116_p11 }
  0x40   : > { %2126 = shalt.err (!%p2123_p9)
}
  0x41   : > { %1885 = dma.hbm_to_vmem [thread:$0]  (!%p2368_p12), %s2840_s2, 64, %s2372_s26, [#allocation5]  }
  0x42   : > { %s2127_s14 = scalar_lea.hbm %s2844_s6, 256 }
  0x43   : > { %p2128_p2 = scmp.ne.s32.totalorder %s2844_s6, %s2127_s14  ;;  %p2134_p7 = scmp.lt.u32.totalorder %s2127_s14, %s2844_s6 }
  0x45   : > { %p2130_p3 = pnand %p2128_p2, %p2384_p0 }
  0x47   : > { %p2131_p4 = pneg %p2130_p3 }
  0x49   : > { %p2136_p8 = pnand %p2134_p7, %p2131_p4 }
  0x4b   : > { %2139 = shalt.err (!%p2136_p8)
}
  0x4c   : > { %s2140_s27 = scalar_lea.vmem %s297_s28, 256  ;;  %p2148_p6 = scmp.lt.s32.totalorder %s297_s28, %s297_s28 }
  0x4d   : > { %p2141_p11 = scmp.ne.s32.totalorder %s297_s28, %s2140_s27  ;;  %p2149_p9 = scmp.lt.s32.totalorder %s2140_s27, %s2140_s27 }
  0x4f   : > { %p2143_p13 = pnand %p2141_p11, %p2384_p0  ;;  %p2150_p5 = por %p2149_p9, %p2148_p6 }
  0x51   : > { %p2144_p1 = pneg %p2143_p13 }
  0x53   : > { %p2151_p10 = pnand %p2150_p5, %p2144_p1 }
  0x55   : > { %2154 = shalt.err (!%p2151_p10)
}
  0x56   : > { %s2232_s26 = smov 128   ;;  %s2233_s29 = smov 8  }
  0x57   : > { %1891 = dma.hbm_to_vmem [thread:$0]  (!%p2368_p12), %s2844_s6, 256, %s297_s28, [#allocation8], %s2232_s26, %s2232_s26, %s2233_s29  }
  0x58   : > { %p2872_p2 = scmp.ne.s32.totalorder %s2869_s21, 0 }
  0x59   : > { %p2873_p3 = scmp.eq.s32.totalorder (!%p2872_p2), %s2330_s13, 0 }
  0x5a   : > { %332 = sbr.rel (%p2872_p2) target bundleno = 3216 (0xc90), region = 56 }
  0x61   : > { %2200 = dma.done.wait (%p2873_p3), [#allocation5], 64   ;;  %p2874_p0 = pmov %p2873_p3 }
  0x63   : > { %2202 = vsyncadd (%p2874_p0), [#allocation5], 4294967232  ;;  %p2875_p5 = pmov %p2874_p0 }
  0x64   : > { %p2876_p10 = pmov %p2874_p0 }
  0x65   : > { %2204 = dma.done.wait (%p2875_p5), [#allocation8], 384  }
  0x66   : > { %2206 = vsyncadd (%p2876_p10), [#allocation8], 4294966912  ;;  %p379_p4 = scmp.lt.s32.totalorder %s2330_s13, 1  ;;  %v423_v0 = vlaneseq  ;;  %vm393_vm0 = vcmask 134144   ;;  %vm395_vm1 = vcmask 273544   ;;  %vm397_vm2 = vcmask 138240  }
  0x67   : > { %v2234_v1 = vmov 0   ;;  %v392_v7 = vld [vmem:[#allocation4 + $0x1] ss:$2 sm:$0x3]  ;;  %s2235_s15 = smov 17   ;;  %s2236_s20 = smov 2  }
  0x68   : > { %394 = vst.msk [vmem:[#allocation2] sm:$0xf] %vm393_vm0, %v2234_v1  ;;  %685 = vmatprep.mubr.bf16.mxu0 %v2234_v1  ;;  %2006 = vset.pattern.permute.xlu1 %v2234_v1  ;;  %s2463_s18 = scalar_select %p379_p4, %s2330_s13, 1  ;;  %v424_v2 = vshrl.u32 %v423_v0, 7  ;;  %vm417_vm3 = vcmask 1043592   ;;  %vm418_vm4 = vcmask 1047556  }
  0x69   : > { %396 = vst.msk [vmem:[#allocation2 + $0x8] sm:$0xf] %vm395_vm1, %v2234_v1  ;;  %2007 = vset.pattern.permute.xlu0 %v2234_v1  ;;  %v390_v10 = vld [vmem:[#allocation4] ss:$2 sm:$0x3]  ;;  %s2237_s14 = smov 16   ;;  %vm419_vm5 = vmor %vm418_vm4, %vm417_vm3 }
  0x6a   : > { %398 = vst.msk [vmem:[#allocation3] sm:$0xff] %vm397_vm2, %v2234_v1  ;;  %s1805_s21 = sshll.u32 %s2463_s18, 4  ;;  %v429_v3 = vsub.s32 1, %v424_v2  ;;  %v2475_v4 = vsub.s32 0, %v424_v2  ;;  %s2238_s16 = smov 18   ;;  %vm465_vm6 = vcmask 130048  }
  0x6b   : > { %s2473_s11 = scalar_lea.vmem %s2838_s0, %s1805_s21  ;;  %s2239_s17 = smov 32   ;;  %vm453_vm7 = vcmask 15360   ;;  %vm477_vm8 = vcmask 146432   ;;  %vm489_vm9 = vcmask 261120   ;;  %vm501_vm10 = vcmask 277504   ;;  %v2553_v58 = vld [vmem:[%s2845_s7 + $0x8] sm:$0xff] }
  0x6c   : > { %v401_v5 = vld [vmem:[%s2473_s11] sm:$0xff]  ;;  %v402_v6 = vld [vmem:[%s2473_s11 + $0x8] sm:$0xff]  ;;  %v2479_v9 = vrot.slane %v392_v7, %v429_v3  ;;  %v2485_v11 = vrot.slane %v392_v7, %v2475_v4  ;;  %v2488_v12 = vrot.slane %v390_v10, %v2475_v4  ;;  %v2494_v13 = vrot.slane %v390_v10, %v429_v3  ;;  %s2240_s22 = smov 34   ;;  %s2241_s25 = smov 127  }
  0x6d   : > { %v1806_v8 = vpack.c.bf16 %v402_v6, %v401_v5  ;;  %s2858_s27 = smov 95   ;;  %s2243_s26 = smov 111   ;;  %v2559_v59 = vld [vmem:[%s2845_s7] sm:$0xff]  ;;  %vm518_vm11 = vcmask 1039360   ;;  %vm546_vm12 = vcmask 916480   ;;  %vm532_vm13 = vcmask 1031168  }
  0x6e   : > { %451 = vrot.lane.b32.xlu1 %v2479_v9, %s2236_s20  ;;  %s2860_s29 = smov 112   ;;  %s2245_s23 = smov 126   ;;  %vm557_vm14 = vcmask 908288   ;;  %vm571_vm15 = vcmask 900096   ;;  %vm585_vm1 = vcmask 785408   ;;  %vm610_vm3 = vcmask 769024  }
  0x6f   : > { %410 = vrot.lane.b32.xlu0 %v1806_v8, %s2235_s15  ;;  %s2856_s30 = smov 110   ;;  %s2247_s21 = smov 96   ;;  %vm646_vm4 = vcmask 1043456  }
  0x70   : > { %s2248_s24 = smov 94   ;;  %p2880_p7 = scmp.ne.s32.totalorder %s2866_s19, 0 }
  0x72   : > { %461 = vrot.lane.b32.xlu1 %v2488_v12, %s2237_s14 }
  0x73   : > { %449 = vrot.lane.b32.xlu0 %v2485_v11, %s2236_s20 }
  0x76   : > { %473 = vrot.lane.b32.xlu1 %v2485_v11, %s2238_s16 }
  0x77   : > { %463 = vrot.lane.b32.xlu0 %v2494_v13, %s2237_s14 }
  0x7a   : > { %485 = vrot.lane.b32.xlu1 %v2488_v12, %s2239_s17 }
  0x7b   : > { %475 = vrot.lane.b32.xlu0 %v2479_v9, %s2238_s16 }
  0x7e   : > { %497 = vrot.lane.b32.xlu1 %v2485_v11, %s2240_s22 }
  0x7f   : > { %487 = vrot.lane.b32.xlu0 %v2494_v13, %s2239_s17 }
  0x83   : > { %499 = vrot.lane.b32.xlu0 %v2479_v9, %s2240_s22 }
  0xe0   : > { %v452_v17 = vpop.permute.xlu1 %451 }
  0xe1   : > { %v411_v14 = vpop.permute.xlu0 %410 }
  0xe2   : > { %v412_v15 = vrot.slane %v411_v14, 4 }
  0xe4   : > { %v414_v16 = vsel %vm397_vm2, %v412_v15, %v411_v14  ;;  %421 = vst.msk [vmem:[#allocation2 + $0x8] sm:$0xf] %vm393_vm0, %v412_v15  ;;  %v462_v24 = vpop.permute.xlu1 %461  ;;  %vm596_vm0 = vcmask 777216  }
  0xe5   : > { %420 = vst.msk [vmem:[#allocation2] sm:$0xff] %vm419_vm5, %v414_v16  ;;  %v450_v18 = vpop.permute.xlu0 %449  ;;  %vm642_vm5 = vcmask 588800  }
  0xe6   : > { %v454_v31 = vsel %vm453_vm7, %v450_v18, %v452_v17 }
  0xe8   : > { %v474_v33 = vpop.permute.xlu1 %473 }
  0xe9   : > { %v464_v25 = vpop.permute.xlu0 %463 }
  0xea   : > { %v466_v26 = vsel %vm465_vm6, %v462_v24, %v464_v25 }
  0xeb   : > { %v447_v19 = vld [vmem:[#allocation2 + $0x8] sm:$0xf] }
  0xec   : > { %v442_v20 = vld [vmem:[#allocation2] sm:$0xff]  ;;  %v448_v21 = vunpack.c.l.bf16 %v447_v19  ;;  %v486_v41 = vpop.permute.xlu1 %485 }
  0xed   : > { %v2512_v22 = vunpack.c.l.bf16 %v442_v20  ;;  %v2514_v23 = vunpack.c.h.bf16 %v442_v20  ;;  %v476_v30 = vpop.permute.xlu0 %475 }
  0xee   : > { %v472_v29 = vmul.f32 %v464_v25, %v448_v21  ;;  %v478_v34 = vsel %vm477_vm8, %v474_v33, %v476_v30  ;;  %v460_v35 = vmul.f32 %v452_v17, %v448_v21  ;;  %v484_v39 = vmul.f32 %v476_v30, %v448_v21 }
  0xef   : > { %512 = vrot.lane.b32.xlu0 %v2512_v22, %s2241_s25  ;;  %v1966_v27 = vpack.i.bf16 %v448_v21, %v2514_v23  ;;  %v471_v28 = vmul.f32 %v466_v26, %v2514_v23  ;;  %v459_v36 = vmul.f32 %v454_v31, %v2514_v23  ;;  %v470_v37 = vmul.f32 %v462_v24, %v2512_v22 }
  0xf0   : > { %v483_v38 = vmul.f32 %v478_v34, %v2514_v23  ;;  %v458_v45 = vmul.f32 %v450_v18, %v2512_v22  ;;  %v482_v48 = vmul.f32 %v474_v33, %v2512_v22  ;;  %v498_v51 = vpop.permute.xlu1 %497  ;;  %v494_v53 = vmul.f32 %v486_v41, %v2512_v22 }
  0xf1   : > { %1967 = vrot.lane.b32.xlu1 %v1966_v27, %s2241_s25  ;;  %v1986_v32 = vpack.i.bf16 %v472_v29, %v471_v28  ;;  %v488_v40 = vpop.permute.xlu0 %487  ;;  %v1981_v42 = vpack.i.bf16 %v460_v35, %v459_v36  ;;  %v506_v56 = vmul.f32 %v498_v51, %v2512_v22  ;;  %v446_v2 = vmul.f32 %v2514_v23, %v2494_v13 }
  0xf2   : > { %v1991_v43 = vpack.i.bf16 %v484_v39, %v483_v38  ;;  %v490_v44 = vsel %vm489_vm9, %v486_v41, %v488_v40  ;;  %v496_v47 = vmul.f32 %v488_v40, %v448_v21  ;;  %v445_v3 = vmul.f32 %v2512_v22, %v2488_v12 }
  0xf3   : > { %1977 = vrot.lane.b32.xlu0 %v1966_v27, %s2858_s27  ;;  %v495_v46 = vmul.f32 %v490_v44, %v2514_v23 }
  0xf5   : > { %1972 = vrot.lane.b32.xlu1 %v1966_v27, %s2243_s26  ;;  %v500_v49 = vpop.permute.xlu0 %499  ;;  %v1996_v50 = vpack.i.bf16 %v496_v47, %v495_v46 }
  0xf6   : > { %v502_v52 = vsel %vm501_vm10, %v498_v51, %v500_v49  ;;  %v508_v55 = vmul.f32 %v500_v49, %v448_v21 }
  0xf7   : > { %1987 = vrot.lane.b32.xlu0 %v1986_v32, %s2860_s29  ;;  %v507_v54 = vmul.f32 %v502_v52, %v2514_v23 }
  0xf9   : > { %551 = vrot.lane.b32.xlu1 %v2512_v22, %s2243_s26  ;;  %v2001_v57 = vpack.i.bf16 %v507_v54, %v506_v56 }
  0xfb   : > { %540 = vrot.lane.b32.xlu0 %v470_v37, %s2860_s29 }
  0xfd   : > { %1982 = vrot.lane.b32.xlu1 %v1981_v42, %s2245_s23 }
  0xff   : > { %1992 = vrot.lane.b32.xlu0 %v1991_v43, %s2856_s30 }
 0x101   : > { %526 = vrot.lane.b32.xlu1 %v458_v45, %s2245_s23 }
 0x103   : > { %565 = vrot.lane.b32.xlu0 %v482_v48, %s2856_s30  ;;  %s386_s30 = scalar_lea.vmem %s2839_s1, %s2463_s18  ;;  %s2877_s18 = smov 112  }
 0x105   : > { %1997 = vrot.lane.b32.xlu1 %v1996_v50, %s2247_s21 }
 0x107   : > { %590 = vrot.lane.b32.xlu0 %v2512_v22, %s2858_s27 }
 0x109   : > { %579 = vrot.lane.b32.xlu1 %v494_v53, %s2247_s21 }
 0x10b   : > { %608 = vrot.lane.b32.xlu0 %v508_v55, %s2248_s24 }
 0x10d   : > { %2002 = vrot.lane.b32.xlu1 %v2001_v57, %s2248_s24 }
 0x10f   : > { %634 = vperm.xlu0 %2007, %v2553_v58  }
 0x111   : > { %629 = vperm.xlu1 %2006, %v2559_v59  }
 0x161   : > { %v513_v60 = vpop.permute.xlu0 %512 }
 0x163   : > { %v1968_v61 = vpop.permute.xlu1 %1967 }
 0x164   : > { %v1970_v62 = vunpack.i.h.bf16 %v1968_v61  ;;  %v1969_v63 = vunpack.i.l.bf16 %v1968_v61 }
 0x165   : > { %v1978_v0 = vpop.permute.xlu0 %1977 }
 0x166   : > { %v520_v5 = vsel %vm518_vm11, %v1969_v63, %v1970_v62  ;;  %v519_v6 = vsel %vm518_vm11, %v513_v60, %v1969_v63  ;;  %v1980_v38 = vunpack.i.h.bf16 %v1978_v0  ;;  %v1979_v39 = vunpack.i.l.bf16 %v1978_v0 }
 0x167   : > { %v1973_v7 = vpop.permute.xlu1 %1972  ;;  %v616_v8 = vpack.c.bf16 %v520_v5, %v446_v2  ;;  %v615_v10 = vpack.c.bf16 %v519_v6, %v445_v3  ;;  %v2025_v2 = vld [vmem:[#allocation7] sm:$0xff]  }
 0x168   : > { %v1975_v19 = vunpack.i.h.bf16 %v1973_v7  ;;  %v1974_v20 = vunpack.i.l.bf16 %v1973_v7  ;;  %v598_v48 = vsel %vm596_vm0, %v1979_v39, %v1980_v38 }
 0x169   : > { %v1988_v14 = vpop.permute.xlu0 %1987  ;;  %653 = vmatprep.subr.bf16.mxu0 %v616_v8 }
 0x16a   : > { %654 = vmatpush1.bf16.msra.mxu0 %v615_v10  ;;  %v1990_v17 = vunpack.i.h.bf16 %v1988_v14  ;;  %v1989_v18 = vunpack.i.l.bf16 %v1988_v14  ;;  %v559_v31 = vsel %vm557_vm14, %v1974_v20, %v1975_v19 }
 0x16b   : > { %v552_v15 = vpop.permute.xlu1 %551 }
 0x16c   : > { %v548_v28 = vsel %vm546_vm12, %v1989_v18, %v1990_v17  ;;  %v558_v42 = vsel %vm557_vm14, %v552_v15, %v1974_v20  ;;  %v2586_v20 = vld [vmem:[%s2841_s3] sm:$0xff] }
 0x16d   : > { %v541_v16 = vpop.permute.xlu0 %540  ;;  %1835 = vmatprep.mubr.msk.f32.mxu1 %vm465_vm6, %v2586_v20 }
 0x16e   : > { %v547_v33 = vsel %vm546_vm12, %v541_v16, %v1989_v18 }
 0x16f   : > { %v1983_v21 = vpop.permute.xlu1 %1982 }
 0x170   : > { %v1985_v22 = vunpack.i.h.bf16 %v1983_v21  ;;  %v1984_v23 = vunpack.i.l.bf16 %v1983_v21 }
 0x171   : > { %v1993_v24 = vpop.permute.xlu0 %1992 }
 0x172   : > { %v1995_v25 = vunpack.i.h.bf16 %v1993_v24  ;;  %v1994_v26 = vunpack.i.l.bf16 %v1993_v24  ;;  %v534_v27 = vsel %vm532_vm13, %v1984_v23, %v1985_v22  ;;  %v2595_v24 = vld [vmem:[%s2841_s3 + $0x8] sm:$0xff] }
 0x173   : > { %v527_v29 = vpop.permute.xlu1 %526  ;;  %v618_v30 = vpack.c.bf16 %v548_v28, %v534_v27 }
 0x174   : > { %v573_v32 = vsel %vm571_vm15, %v1994_v26, %v1995_v25  ;;  %v533_v34 = vsel %vm532_vm13, %v527_v29, %v1984_v23 }
 0x175   : > { %v566_v35 = vpop.permute.xlu0 %565  ;;  %v620_v36 = vpack.c.bf16 %v573_v32, %v559_v31  ;;  %v617_v37 = vpack.c.bf16 %v547_v33, %v533_v34  ;;  %655 = vmatprep.subr.bf16.mxu0 %v618_v30 }
 0x176   : > { %v572_v40 = vsel %vm571_vm15, %v566_v35, %v1994_v26 }
 0x177   : > { %v1998_v41 = vpop.permute.xlu1 %1997  ;;  %656 = vmatpush1.bf16.msra.mxu0 %v617_v37  ;;  %v619_v45 = vpack.c.bf16 %v572_v40, %v558_v42  ;;  %v957_v40 = vld [vmem:[#allocation9 + $0x8] sm:$0xff] }
 0x178   : > { %v2000_v43 = vunpack.i.h.bf16 %v1998_v41  ;;  %v1999_v44 = vunpack.i.l.bf16 %v1998_v41  ;;  %657 = vmatprep.subr.bf16.mxu0 %v620_v36  ;;  %v1786_v41 = vld [vmem:[%s386_s30] ss:$0 sm:$0xff]  ;;  %s1807_s30 = sshll.u32 %s2330_s13, 9 }
 0x179   : > { %v591_v46 = vpop.permute.xlu0 %590 }
 0x17a   : > { %v587_v47 = vsel %vm585_vm1, %v1999_v44, %v2000_v43  ;;  %v597_v51 = vsel %vm596_vm0, %v591_v46, %v1979_v39  ;;  %v956_v39 = vld [vmem:[#allocation9] sm:$0xff]  ;;  %v966_v43 = vmul.f32 %v1786_v41, %v957_v40 }
 0x17b   : > { %v580_v49 = vpop.permute.xlu1 %579  ;;  %658 = vmatpush1.bf16.msra.mxu0 %v619_v45  ;;  %v622_v50 = vpack.c.bf16 %v598_v48, %v587_v47  ;;  %v965_v42 = vmul.f32 %v1786_v41, %v956_v39 }
 0x17c   : > { %v586_v52 = vsel %vm585_vm1, %v580_v49, %v1999_v44  ;;  %v970_v45 = vsel %vm489_vm9, %v966_v43, 0.0  ;;  %v2249_v49 = vmov 1  }
 0x17d   : > { %v621_v53 = vpack.c.bf16 %v597_v51, %v586_v52  ;;  %659 = vmatprep.subr.bf16.mxu0 %v622_v50  ;;  %v609_v57 = vpop.permute.xlu0 %608  ;;  %v967_v44 = vsel %vm489_vm9, %v965_v42, 0.0 }
 0x17f   : > { %v2003_v54 = vpop.permute.xlu1 %2002  ;;  %660 = vmatpush1.bf16.msra.mxu0 %v621_v53 }
 0x180   : > { %v2005_v55 = vunpack.i.h.bf16 %v2003_v54  ;;  %v2004_v56 = vunpack.i.l.bf16 %v2003_v54 }
 0x182   : > { %v612_v60 = vsel %vm610_vm3, %v2005_v55, %v609_v57  ;;  %v611_v61 = vsel %vm610_vm3, %v2004_v56, %v2005_v55 }
 0x183   : > { %v624_v62 = vpack.c.bf16 %v612_v60, %v612_v60  ;;  %v623_v63 = vpack.c.bf16 %v611_v61, %v611_v61  ;;  %v2250_v61 = vmov 2  }
 0x185   : > { %1776 = vmatprep.subr.msk.bf16.mxu0 %vm646_vm4, %v624_v62  ;;  %v648_v0 = vsel %vm646_vm4, %v623_v63, 0  ;;  %vm399_vm4 = vcmask 277640  }
 0x186   : > { %662 = vmatpush1.bf16.msra.mxu0 %v648_v0  ;;  %400 = vst.msk [vmem:[#allocation3 + $0x10] sm:$0xff] %vm399_vm4, %v2234_v1 }
 0x189   : > { %1777 = vmatmul.mubr.msk.bf16.vlgmr.msra.gmra.mrb[0].mxu0 %vm642_vm5, %v2025_v2  ;;  %v2251_v2 = vmov 3   ;;  %vm1001_vm5 = vcmask 1047688  }
 0x18a   : > { %1828 = vmatprep.mubr.msk.f32.mxu0 %vm465_vm6, %v2586_v20 }
 0x18e   : > { %v635_v6 = vpop.permute.xlu0 %634 }
 0x190   : > { %v630_v3 = vpop.permute.xlu1 %629 }
 0x25c   : > { %v687_v5 = vpop.f32.mrb[0].mxu0 }
 0x25d   : > { %v688_v7 = vadd.f32 %v687_v5, %v630_v3  ;;  %v689_v8 = vpop.f32.mrb[1].mxu0 }
 0x25e   : > { %v690_v10 = vadd.f32 %v689_v8, %v630_v3  ;;  %v691_v14 = vpop.f32.mrb[2].mxu0  ;;  %v1023_v3 = vpack.c.bf16 %v2485_v11, %v2485_v11 }
 0x25f   : > { %v692_v15 = vadd.f32 %v691_v14, %v635_v6  ;;  %v693_v16 = vpop.f32.mrb[3].mxu0 }
 0x260   : > { %v694_v17 = vadd.f32 %v693_v16, %v635_v6  ;;  %v698_v18 = vadd.f32 %v690_v10, %v688_v7  ;;  %v1026_v5 = vpack.i.b16 %v1023_v3, %v1023_v3 }
 0x262   : > { %699 = vadd.xlane.f32.xlu1 %v698_v18  ;;  %v701_v19 = vadd.f32 %v694_v17, %v692_v15  ;;  %v1031_v6 = vrot.slane %v1026_v5, %v2475_v4 }
 0x264   : > { %702 = vadd.xlane.f32.xlu0 %v701_v19 }
 0x2ef   : > { %v700_v21 = vpop.xlane.xlu1 %699 }
 0x2f1   : > { %v703_v22 = vpop.xlane.xlu0 %702 }
 0x2f2   : > { %v1852_v23 = vpack.c.bf16 %v703_v22, %v700_v21 }
 0x2f4   : > { %1853 = vmatprep.subr.bf16.mxu0 %v1852_v23 }
 0x2f5   : > { %1855 = vmatpush3.bf16.msra.mxu0 %v1852_v23 }
 0x2f8   : > { %1829 = vmatmul.mubr.msk.f32.vlgmr.msra.gmra.mrb[4].mxu0 %vm465_vm6, %v2595_v24 }
 0x2f9   : > { %1842 = vmatprep.mubr.msk.f32.mxu0 %vm465_vm6, %v2586_v20 }
 0x3cb   : > { %v1830_v25 = vpop.f32.mrb[4].mxu0 }
 0x3cc   : > { %792 = vperm.xlu0 %2007, %v1830_v25   ;;  %v776_v26 = vpop.f32.mrb[5].mxu0 }
 0x3cd   : > { %787 = vperm.xlu1 %2006, %v776_v26  }
 0x3d1   : > { %2008 = vset.pattern.permute.xlu1 %v2249_v49 }
 0x44b   : > { %v793_v27 = vpop.permute.xlu0 %792 }
 0x44c   : > { %v2601_v28 = vsub.f32 %v692_v15, %v793_v27  ;;  %v2603_v29 = vsub.f32 %v694_v17, %v793_v27  ;;  %v788_v30 = vpop.permute.xlu1 %787 }
 0x44d   : > { %v2605_v31 = vsub.f32 %v688_v7, %v788_v30  ;;  %v2607_v32 = vsub.f32 %v690_v10, %v788_v30  ;;  %v1005_v7 = vpack.c.bf16 %v2488_v12, %v2488_v12 }
 0x44e   : > { %v801_v33 = vmul.f32 %v2601_v28, %v2601_v28  ;;  %v802_v34 = vmul.f32 %v2603_v29, %v2603_v29 }
 0x44f   : > { %v799_v35 = vmul.f32 %v2605_v31, %v2605_v31  ;;  %v800_v36 = vmul.f32 %v2607_v32, %v2607_v32  ;;  %v1008_v8 = vpack.i.b16 %v1005_v7, %v1005_v7 }
 0x450   : > { %v806_v37 = vadd.f32 %v802_v34, %v801_v33 }
 0x451   : > { %v803_v38 = vadd.f32 %v800_v36, %v799_v35  ;;  %v2639_v10 = vrot.slane %v1008_v8, %v2475_v4 }
 0x452   : > { %807 = vadd.xlane.f32.xlu0 %v806_v37 }
 0x453   : > { %804 = vadd.xlane.f32.xlu1 %v803_v38 }
 0x456   : > { %971 = vadd.xlane.f32.xlu0 %v970_v45 }
 0x457   : > { %968 = vadd.xlane.f32.xlu1 %v967_v44 }
 0x468   : > { %905 = vperm.xlu1 %2008, %v2559_v59  }
 0x46c   : > { %909 = vperm.xlu1 %2008, %v2553_v58  }
 0x470   : > { %2010 = vset.pattern.permute.xlu1 %v2234_v1 }
 0x4df   : > { %v808_v46 = vpop.xlane.xlu0 %807 }
 0x4e0   : > { %v805_v47 = vpop.xlane.xlu1 %804 }
 0x4e1   : > { %v1856_v48 = vpack.c.bf16 %v808_v46, %v805_v47 }
 0x4e3   : > { %1857 = vmatprep.subr.bf16.mxu1 %v1856_v48  ;;  %v972_v60 = vpop.xlane.xlu0 %971 }
 0x4e4   : > { %1859 = vmatpush3.bf16.msra.mxu1 %v1856_v48  ;;  %v969_v62 = vpop.xlane.xlu1 %968  ;;  %v974_v63 = vadd.f32 %v972_v60, %v2553_v58 }
 0x4e5   : > { %v973_v0 = vadd.f32 %v969_v62, %v2559_v59 }
 0x4e7   : > { %1836 = vmatmul.mubr.msk.f32.vlgmr.msra.gmra.mrb[0].mxu1 %vm465_vm6, %v2595_v24 }
 0x4e8   : > { %v906_v11 = vpop.permute.xlu1 %905 }
 0x4ec   : > { %v910_v14 = vpop.permute.xlu1 %909 }
 0x5ba   : > { %v1837_v50 = vpop.f32.mrb[0].mxu1 }
 0x5bb   : > { %v885_v51 = vmax.f32 %v1837_v50, 0.0  ;;  %v875_v52 = vpop.f32.mrb[1].mxu1 }
 0x5bc   : > { %v884_v53 = vmax.f32 %v875_v52, 0.0 }
 0x5bd   : > { %v887_v54 = vadd.f32 1e-05, %v885_v51 }
 0x5be   : > { %v886_v55 = vadd.f32 1e-05, %v884_v53 }
 0x5bf   : > { %2029 = vrsqrt.f32 %v887_v54 }
 0x5c0   : > { %2031 = vrsqrt.f32 %v886_v55 }
 0x5c9   : > { %v2030_v56 = vpop.eup %2029 }
 0x5ca   : > { %v2032_v57 = vpop.eup %2031  ;;  %897 = vperm.xlu0 %2007, %v2030_v56   ;;  %v1024_v56 = vpack.c.bf16 %v2479_v9, %v2479_v9 }
 0x5cb   : > { %892 = vperm.xlu1 %2010, %v2032_v57  }
 0x5cc   : > { %v1033_v62 = vpack.i.b16 %v1024_v56, %v1024_v56 }
 0x5ce   : > { %2009 = vset.pattern.permute.xlu0 %v2250_v61 }
 0x5cf   : > { %917 = vperm.xlu0 %2009, %v2559_v59   ;;  %2011 = vset.pattern.permute.xlu1 %v2250_v61 }
 0x5d0   : > { %921 = vperm.xlu1 %2011, %v2553_v58  }
 0x5d3   : > { %2013 = vset.pattern.permute.xlu0 %v2251_v2 }
 0x5d4   : > { %2012 = vset.pattern.permute.xlu1 %v2251_v2  ;;  %982 = vperm.xlu0 %2013, %v974_v63   ;;  %v1006_v63 = vpack.c.bf16 %v2494_v13, %v2494_v13  ;;  %v1038_v2 = vrot.slane %v1033_v62, %v2475_v4 }
 0x5d5   : > { %977 = vperm.xlu1 %2012, %v973_v0  }
 0x5d6   : > { %v1015_v3 = vpack.i.b16 %v1006_v63, %v1006_v63 }
 0x5d8   : > { %1046 = vrot.lane.b32.xlu0 %v1031_v6, %s2236_s20  ;;  %v1020_v5 = vrot.slane %v1015_v3, %v2475_v4 }
 0x5dc   : > { %1060 = vrot.lane.b32.xlu0 %v2639_v10, %s2237_s14 }
 0x5e0   : > { %1072 = vrot.lane.b32.xlu0 %v1031_v6, %s2238_s16 }
 0x5e4   : > { %1084 = vrot.lane.b32.xlu0 %v2639_v10, %s2239_s17 }
 0x5e8   : > { %1096 = vrot.lane.b32.xlu0 %v1031_v6, %s2240_s22 }
 0x649   : > { %v898_v15 = vpop.permute.xlu0 %897 }
 0x64a   : > { %v902_v16 = vmul.f32 %v898_v15, %v2601_v28  ;;  %v903_v12 = vmul.f32 %v898_v15, %v2603_v29  ;;  %v893_v17 = vpop.permute.xlu1 %892 }
 0x64b   : > { %v900_v18 = vmul.f32 %v893_v17, %v2605_v31  ;;  %v901_v19 = vmul.f32 %v893_v17, %v2607_v32 }
 0x64c   : > { %v914_v25 = vmul.f32 %v910_v14, %v902_v16  ;;  %v915_v26 = vmul.f32 %v910_v14, %v903_v12 }
 0x64d   : > { %v912_v21 = vmul.f32 %v906_v11, %v900_v18  ;;  %v913_v22 = vmul.f32 %v906_v11, %v901_v19 }
 0x64e   : > { %v918_v23 = vpop.permute.xlu0 %917 }
 0x64f   : > { %v924_v27 = vadd.f32 %v918_v23, %v912_v21  ;;  %v925_v30 = vadd.f32 %v918_v23, %v913_v22  ;;  %v922_v33 = vpop.permute.xlu1 %921 }
 0x650   : > { %v926_v34 = vadd.f32 %v922_v33, %v914_v25  ;;  %v927_v35 = vadd.f32 %v922_v33, %v915_v26 }
 0x651   : > { %v1782_v36 = vmul.f32 -1.442695, %v924_v27  ;;  %v1783_v37 = vmul.f32 -1.442695, %v925_v30 }
 0x652   : > { %v1784_v28 = vmul.f32 -1.442695, %v926_v34  ;;  %v1785_v38 = vmul.f32 -1.442695, %v927_v35 }
 0x653   : > { %2033 = vpow2.f32 %v1782_v36  ;;  %v983_v49 = vpop.permute.xlu0 %982 }
 0x654   : > { %2035 = vpow2.f32 %v1783_v37  ;;  %v978_v45 = vpop.permute.xlu1 %977 }
 0x655   : > { %2037 = vpow2.f32 %v1784_v28 }
 0x656   : > { %2039 = vpow2.f32 %v1785_v38 }
 0x657   : > { %v1047_v14 = vpop.permute.xlu0 %1046 }
 0x65b   : > { %v1061_v17 = vpop.permute.xlu0 %1060 }
 0x65d   : > { %v2034_v29 = vpop.eup %2033 }
 0x65e   : > { %v2036_v31 = vpop.eup %2035  ;;  %v940_v32 = vadd.f32 1.0, %v2034_v29 }
 0x65f   : > { %v2038_v39 = vpop.eup %2037  ;;  %v941_v40 = vadd.f32 1.0, %v2036_v31  ;;  %v1073_v22 = vpop.permute.xlu0 %1072 }
 0x660   : > { %v2040_v41 = vpop.eup %2039  ;;  %2041 = vrcp.f32 %v940_v32  ;;  %v942_v42 = vadd.f32 1.0, %v2038_v39  ;;  %v2026_v39 = vld [vmem:[%s2843_s5 + $0x4] ss:$8 sps:$4 sm:$0xff]  }
 0x661   : > { %2043 = vrcp.f32 %v941_v40  ;;  %v943_v43 = vadd.f32 1.0, %v2040_v41  ;;  %1789 = vmatprep.mubr.msk.bf16.mxu1 %vm465_vm6, %v2026_v39 }
 0x662   : > { %2045 = vrcp.f32 %v942_v42  ;;  %v2252_v42 = vmov 4  }
 0x663   : > { %2047 = vrcp.f32 %v943_v43  ;;  %v1085_v37 = vpop.permute.xlu0 %1084  ;;  %2014 = vset.pattern.permute.xlu0 %v2252_v42  ;;  %2015 = vset.pattern.permute.xlu1 %v2252_v42 }
 0x667   : > { %v1097_v40 = vpop.permute.xlu0 %1096 }
 0x66a   : > { %v2042_v44 = vpop.eup %2041 }
 0x66b   : > { %v2044_v46 = vpop.eup %2043  ;;  %v952_v47 = vmul.f32 %v2042_v44, %v924_v27 }
 0x66c   : > { %v2046_v48 = vpop.eup %2045  ;;  %v953_v51 = vmul.f32 %v2044_v46, %v925_v30 }
 0x66d   : > { %v2048_v50 = vpop.eup %2047  ;;  %v985_v52 = vadd.f32 %v978_v45, %v952_v47  ;;  %v954_v53 = vmul.f32 %v2046_v48, %v926_v34 }
 0x66e   : > { %v955_v54 = vmul.f32 %v2048_v50, %v927_v35  ;;  %v986_v57 = vadd.f32 %v978_v45, %v953_v51 }
 0x66f   : > { %v987_v55 = vadd.f32 %v983_v49, %v954_v53 }
 0x670   : > { %v988_v60 = vadd.f32 %v983_v49, %v955_v54 }
 0x671   : > { %v989_v61 = vpack.c.bf16 %v987_v55, %v985_v52 }
 0x672   : > { %v990_v0 = vpack.c.bf16 %v988_v60, %v986_v57 }
 0x673   : > { %993 = vrot.lane.b32.xlu1 %v989_v61, %s2235_s15 }
 0x677   : > { %995 = vrot.lane.b32.xlu1 %v990_v0, %s2235_s15  ;;  %s2878_s15 = smov 110  }
 0x67b   : > { %1048 = vrot.lane.b32.xlu1 %v1038_v2, %s2236_s20  ;;  %s2879_s20 = smov 95  }
 0x67f   : > { %1062 = vrot.lane.b32.xlu1 %v1020_v5, %s2237_s14 }
 0x683   : > { %1074 = vrot.lane.b32.xlu1 %v1038_v2, %s2238_s16 }
 0x687   : > { %1086 = vrot.lane.b32.xlu1 %v1020_v5, %s2239_s17  ;;  %s2257_s17 = smov [#allocation10]  }
 0x68b   : > { %1098 = vrot.lane.b32.xlu1 %v1038_v2, %s2240_s22  ;;  %s2159_s22 = sshll.u32 %s2257_s17, 4  ;;  %s2160_s22 = int_to_ptr.vmem [resolvable:$false] %s2159_s22 }
 0x6e5   : > { %v994_v9 = vpop.permute.xlu1 %993 }
 0x6e6   : > { %1002 = vst.msk [vmem:[#allocation3] sm:$0xff] %vm1001_vm5, %v994_v9 }
 0x6e9   : > { %v996_v13 = vpop.permute.xlu1 %995 }
 0x6ea   : > { %v2666_v6 = vsel %vm397_vm2, %v994_v9, %v996_v13  ;;  %1004 = vst.msk [vmem:[#allocation3 + $0x10] sm:$0xff] %vm397_vm2, %v996_v13  ;;  %vm1553_vm2 = vcmask 64512  }
 0x6eb   : > { %v1042_v7 = vmul.bf16 %v1020_v5, %v2666_v6 }
 0x6ed   : > { %v2670_v4 = vld [vmem:[#allocation3] sm:$0xff]  ;;  %1236 = vmatprep.subr.bf16.mxu1 %v1042_v7  ;;  %v1049_v15 = vpop.permute.xlu1 %1048 }
 0x6ee   : > { %1111 = vrot.lane.b32.xlu0 %v2670_v4, %s2241_s25  ;;  %v1041_v8 = vmul.bf16 %v2670_v4, %v2639_v10  ;;  %v1055_v12 = vmul.bf16 %v1047_v14, %v2670_v4  ;;  %v1069_v19 = vmul.bf16 %v1061_v17, %v2670_v4  ;;  %v1051_v21 = vsel %vm453_vm7, %v1047_v14, %v1049_v15 }
 0x6ef   : > { %v1056_v25 = vmul.bf16 %v1051_v21, %v2666_v6  ;;  %v1081_v26 = vmul.bf16 %v1073_v22, %v2670_v4  ;;  %v1093_v28 = vmul.bf16 %v1085_v37, %v2670_v4  ;;  %v1105_v45 = vmul.bf16 %v1097_v40, %v2670_v4 }
 0x6f0   : > { %1237 = vmatpush1.bf16.msra.mxu1 %v1041_v8 }
 0x6f1   : > { %v1043_v11 = vld [vmem:[#allocation3 + $0x10] sm:$0xff]  ;;  %v1063_v18 = vpop.permute.xlu1 %1062 }
 0x6f2   : > { %1154 = vrot.lane.b32.xlu0 %v1043_v11, %s2243_s26  ;;  %1115 = vrot.lane.b32.xlu1 %v1043_v11, %s2241_s25  ;;  %v1057_v16 = vmul.bf16 %v1049_v15, %v1043_v11  ;;  %v1071_v10 = vmul.bf16 %v1063_v18, %v1043_v11  ;;  %v1065_v27 = vsel %vm465_vm6, %v1061_v17, %v1063_v18 }
 0x6f3   : > { %v1070_v30 = vmul.bf16 %v1065_v27, %v2666_v6  ;;  %v2028_v27 = vld [vmem:[%s2843_s5] ss:$8 sps:$4 sm:$0xff]  }
 0x6f5   : > { %v1075_v23 = vpop.permute.xlu1 %1074 }
 0x6f6   : > { %1152 = vrot.lane.b32.xlu1 %v2666_v6, %s2243_s26  ;;  %1113 = vrot.lane.b32.xlu0 %v2666_v6, %s2241_s25  ;;  %v1083_v34 = vmul.bf16 %v1075_v23, %v1043_v11  ;;  %v1077_v36 = vsel %vm477_vm8, %v1073_v22, %v1075_v23  ;;  %s2161_s25 = scalar_lea.vmem %s2160_s22, 1024 }
 0x6f7   : > { %v1082_v38 = vmul.bf16 %v1077_v36, %v2666_v6 }
 0x6f9   : > { %v1087_v33 = vpop.permute.xlu1 %1086 }
 0x6fa   : > { %1125 = vrot.lane.b32.xlu1 %v1055_v12, %s2245_s23  ;;  %1129 = vrot.lane.b32.xlu0 %v1057_v16, %s2245_s23  ;;  %v1095_v35 = vmul.bf16 %v1087_v33, %v1043_v11  ;;  %v1089_v29 = vsel %vm489_vm9, %v1085_v37, %v1087_v33 }
 0x6fb   : > { %v1094_v31 = vmul.bf16 %v1089_v29, %v2666_v6 }
 0x6fd   : > { %v1099_v32 = vpop.permute.xlu1 %1098 }
 0x6fe   : > { %1139 = vrot.lane.b32.xlu0 %v1069_v19, %s2877_s18  ;;  %1143 = vrot.lane.b32.xlu1 %v1071_v10, %s2877_s18  ;;  %v1101_v41 = vsel %vm501_vm10, %v1097_v40, %v1099_v32  ;;  %v1107_v44 = vmul.bf16 %v1099_v32, %v1043_v11 }
 0x6ff   : > { %v1106_v43 = vmul.bf16 %v1101_v41, %v2666_v6 }
 0x702   : > { %1164 = vrot.lane.b32.xlu0 %v1081_v26, %s2878_s15  ;;  %1127 = vrot.lane.b32.xlu1 %v1056_v25, %s2245_s23 }
 0x706   : > { %1150 = vrot.lane.b32.xlu1 %v2670_v4, %s2243_s26  ;;  %1141 = vrot.lane.b32.xlu0 %v1070_v30, %s2877_s18 }
 0x70a   : > { %1168 = vrot.lane.b32.xlu1 %v1083_v34, %s2878_s15  ;;  %1182 = vrot.lane.b32.xlu0 %v1095_v35, %s2247_s21 }
 0x70e   : > { %1178 = vrot.lane.b32.xlu1 %v1093_v28, %s2247_s21  ;;  %1166 = vrot.lane.b32.xlu0 %v1082_v38, %s2878_s15 }
 0x712   : > { %1191 = vrot.lane.b32.xlu0 %v2666_v6, %s2879_s20  ;;  %1180 = vrot.lane.b32.xlu1 %v1094_v31, %s2247_s21 }
 0x716   : > { %1189 = vrot.lane.b32.xlu0 %v2670_v4, %s2879_s20  ;;  %1193 = vrot.lane.b32.xlu1 %v1043_v11, %s2879_s20  ;;  %s2794_s20 = scalar_lea.hbm %s2847_s9, %s1807_s30 }
 0x71a   : > { %1207 = vrot.lane.b32.xlu0 %v1107_v44, %s2248_s24  ;;  %1205 = vrot.lane.b32.xlu1 %v1106_v43, %s2248_s24 }
 0x71e   : > { %1203 = vrot.lane.b32.xlu1 %v1105_v45, %s2248_s24  ;;  %1217 = vperm.xlu0 %2014, %v2559_v59  }
 0x722   : > { %1221 = vperm.xlu1 %2015, %v2553_v58   ;;  %2016 = vset.pattern.permute.xlu0 %v2234_v1 }
 0x726   : > { %2017 = vset.pattern.permute.xlu1 %v2234_v1 }
 0x760   : > { %v1112_v46 = vpop.permute.xlu0 %1111 }
 0x764   : > { %v1155_v47 = vpop.permute.xlu0 %1154  ;;  %v1116_v48 = vpop.permute.xlu1 %1115 }
 0x768   : > { %v1114_v49 = vpop.permute.xlu0 %1113  ;;  %v1153_v50 = vpop.permute.xlu1 %1152 }
 0x769   : > { %v1118_v51 = vsel %vm518_vm11, %v1112_v46, %v1114_v49  ;;  %v1119_v52 = vsel %vm518_vm11, %v1114_v49, %v1116_v48  ;;  %v1158_v5 = vsel %vm557_vm14, %v1153_v50, %v1155_v47 }
 0x76a   : > { %1238 = vmatprep.subr.bf16.mxu1 %v1119_v52 }
 0x76b   : > { %1239 = vmatpush1.bf16.msra.mxu1 %v1118_v51 }
 0x76c   : > { %v1130_v53 = vpop.permute.xlu0 %1129  ;;  %v1126_v54 = vpop.permute.xlu1 %1125 }
 0x770   : > { %v1140_v55 = vpop.permute.xlu0 %1139  ;;  %v1144_v56 = vpop.permute.xlu1 %1143 }
 0x774   : > { %v1165_v57 = vpop.permute.xlu0 %1164  ;;  %v1128_v60 = vpop.permute.xlu1 %1127 }
 0x775   : > { %v1132_v61 = vsel %vm532_vm13, %v1126_v54, %v1128_v60  ;;  %v1133_v62 = vsel %vm532_vm13, %v1128_v60, %v1130_v53 }
 0x776   : > { %1240 = vmatprep.subr.bf16.mxu1 %v1133_v62  ;;  %v2070_v62 = vld [vmem:[%s2473_s11] sm:$0xff] }
 0x777   : > { %1241 = vmatpush1.bf16.msra.mxu1 %v1132_v61  ;;  %v2069_v61 = vld [vmem:[%s2473_s11 + $0x8] sm:$0xff]  ;;  %s376_s11 = sand.u32 1, %s2217_s10  }
 0x778   : > { %v1142_v63 = vpop.permute.xlu0 %1141  ;;  %v1151_v0 = vpop.permute.xlu1 %1150  ;;  %s1771_s28 = sshll.u32 %s376_s11, 5  ;;  %s2796_s13 = scalar_lea.sflag [#allocation6], %s376_s11 }
 0x779   : > { %v1146_v2 = vsel %vm546_vm12, %v1140_v55, %v1142_v63  ;;  %v1147_v3 = vsel %vm546_vm12, %v1142_v63, %v1144_v56  ;;  %v1157_v6 = vsel %vm557_vm14, %v1151_v0, %v1153_v50  ;;  %v2253_v63 = vmov 0.0   ;;  %v1539_v0 = vld [vmem:[%s2846_s8] sm:$0xff]  ;;  %s378_s27 = scalar_lea.vmem [#allocation10], %s1771_s28 }
 0x77a   : > { %1242 = vmatprep.subr.bf16.mxu1 %v1147_v3  ;;  %v2254_v3 = vmov 5   ;;  %s1659_s29 = sshll.u32 %s378_s27, 4  ;;  %s2789_s29 = int_to_ptr.vmem [resolvable:$true] %s1659_s29 }
 0x77b   : > { %1243 = vmatpush1.bf16.msra.mxu1 %v1146_v2  ;;  %v1540_v2 = vld [vmem:[%s2846_s8 + $0x8] sm:$0xff]  ;;  %s2155_s16 = scalar_lea.vmem %s2789_s29, 512  ;;  %p2162_p13 = scmp.lt.s32.totalorder %s2789_s29, %s2160_s22 }
 0x77c   : > { %v1183_v9 = vpop.permute.xlu0 %1182  ;;  %1244 = vmatprep.subr.bf16.mxu1 %v1158_v5  ;;  %v1169_v13 = vpop.permute.xlu1 %1168  ;;  %v2256_v5 = vmov 7   ;;  %p2156_p12 = scmp.ne.s32.totalorder %s2789_s29, %s2155_s16  ;;  %p2163_p1 = scmp.lt.s32.totalorder %s2161_s25, %s2155_s16 }
 0x77e   : > { %p2157_p8 = pnand %p2156_p12, %p2880_p7  ;;  %p2164_p6 = por %p2163_p1, %p2162_p13 }
 0x77f   : > { %1245 = vmatpush1.bf16.msra.mxu1 %v1157_v6 }
 0x780   : > { %v1167_v7 = vpop.permute.xlu0 %1166  ;;  %v1179_v4 = vpop.permute.xlu1 %1178  ;;  %p2158_p11 = pneg %p2157_p8 }
 0x781   : > { %v1171_v8 = vsel %vm571_vm15, %v1165_v57, %v1167_v7  ;;  %v1172_v11 = vsel %vm571_vm15, %v1167_v7, %v1169_v13 }
 0x782   : > { %1246 = vmatprep.subr.bf16.mxu1 %v1172_v11  ;;  %p2165_p9 = pnand %p2164_p6, %p2158_p11 }
 0x783   : > { %1247 = vmatpush1.bf16.msra.mxu1 %v1171_v8 }
 0x784   : > { %v1192_v14 = vpop.permute.xlu0 %1191  ;;  %v1181_v15 = vpop.permute.xlu1 %1180 }
 0x785   : > { %v1185_v16 = vsel %vm585_vm1, %v1179_v4, %v1181_v15  ;;  %v1186_v12 = vsel %vm585_vm1, %v1181_v15, %v1183_v9 }
 0x786   : > { %1248 = vmatprep.subr.bf16.mxu1 %v1186_v12 }
 0x787   : > { %1249 = vmatpush1.bf16.msra.mxu1 %v1185_v16 }
 0x788   : > { %v1190_v17 = vpop.permute.xlu0 %1189  ;;  %v1194_v18 = vpop.permute.xlu1 %1193 }
 0x789   : > { %v1196_v10 = vsel %vm596_vm0, %v1190_v17, %v1192_v14  ;;  %v1197_v19 = vsel %vm596_vm0, %v1192_v14, %v1194_v18 }
 0x78a   : > { %1250 = vmatprep.subr.bf16.mxu1 %v1197_v19 }
 0x78b   : > { %1251 = vmatpush1.bf16.msra.mxu1 %v1196_v10 }
 0x78c   : > { %v1208_v21 = vpop.permute.xlu0 %1207  ;;  %v1206_v22 = vpop.permute.xlu1 %1205 }
 0x78d   : > { %v1211_v23 = vsel %vm610_vm3, %v1206_v22, %v1208_v21 }
 0x78e   : > { %1252 = vmatprep.subr.bf16.mxu1 %v1211_v23 }
 0x790   : > { %v1204_v25 = vpop.permute.xlu1 %1203 }
 0x791   : > { %v1210_v26 = vsel %vm610_vm3, %v1204_v25, %v1206_v22 }
 0x792   : > { %1253 = vmatpush1.bf16.msra.mxu1 %v1210_v26 }
 0x795   : > { %1269 = vmatmul.mubr.bf16.vlgmr.msra.gmra.mrb[4].mxu1 %v2028_v27 }
 0x79d   : > { %v1218_v30 = vpop.permute.xlu0 %1217 }
 0x7a1   : > { %v1222_v34 = vpop.permute.xlu1 %1221 }
 0x868   : > { %v1270_v33 = vpop.f32.mrb[4].mxu1 }
 0x869   : > { %v1272_v35 = vpop.f32.mrb[5].mxu1  ;;  %v1271_v36 = vadd.f32 %v1270_v33, %v1218_v30 }
 0x86a   : > { %v1274_v37 = vpop.f32.mrb[6].mxu1  ;;  %v1273_v28 = vadd.f32 %v1272_v35, %v1218_v30 }
 0x86b   : > { %v1276_v38 = vpop.f32.mrb[7].mxu1  ;;  %v1275_v29 = vadd.f32 %v1274_v37, %v1222_v34 }
 0x86c   : > { %v1277_v31 = vadd.f32 %v1276_v38, %v1222_v34  ;;  %v1281_v32 = vadd.f32 %v1273_v28, %v1271_v36 }
 0x86e   : > { %1282 = vadd.xlane.f32.xlu1 %v1281_v32  ;;  %v1284_v39 = vadd.f32 %v1277_v31, %v1275_v29 }
 0x870   : > { %1285 = vadd.xlane.f32.xlu0 %v1284_v39 }
 0x8fb   : > { %v1283_v41 = vpop.xlane.xlu1 %1282 }
 0x8fd   : > { %v1286_v40 = vpop.xlane.xlu0 %1285 }
 0x8fe   : > { %v1860_v42 = vpack.c.bf16 %v1286_v40, %v1283_v41 }
 0x900   : > { %1861 = vmatprep.subr.bf16.mxu0 %v1860_v42 }
 0x901   : > { %1863 = vmatpush3.bf16.msra.mxu0 %v1860_v42 }
 0x904   : > { %1843 = vmatmul.mubr.msk.f32.vlgmr.msra.gmra.mrb[6].mxu0 %vm465_vm6, %v2595_v24 }
 0x905   : > { %1849 = vmatprep.mubr.msk.f32.mxu0 %vm465_vm6, %v2586_v20 }
 0x9d7   : > { %v1844_v43 = vpop.f32.mrb[6].mxu0 }
 0x9d8   : > { %1375 = vperm.xlu1 %2017, %v1844_v43   ;;  %v1359_v44 = vpop.f32.mrb[7].mxu0 }
 0x9d9   : > { %1370 = vperm.xlu0 %2016, %v1359_v44  }
 0x9dc   : > { %2019 = vset.pattern.permute.xlu1 %v2254_v3 }
 0x9dd   : > { %2018 = vset.pattern.permute.xlu0 %v2254_v3 }
 0xa57   : > { %v1376_v45 = vpop.permute.xlu1 %1375 }
 0xa58   : > { %v2750_v46 = vsub.f32 %v1275_v29, %v1376_v45  ;;  %v2752_v47 = vsub.f32 %v1277_v31, %v1376_v45  ;;  %v1371_v48 = vpop.permute.xlu0 %1370 }
 0xa59   : > { %v2754_v49 = vsub.f32 %v1271_v36, %v1371_v48  ;;  %v2756_v50 = vsub.f32 %v1273_v28, %v1371_v48 }
 0xa5a   : > { %v1384_v51 = vmul.f32 %v2750_v46, %v2750_v46  ;;  %v1385_v20 = vmul.f32 %v2752_v47, %v2752_v47 }
 0xa5b   : > { %v1382_v52 = vmul.f32 %v2754_v49, %v2754_v49  ;;  %v1383_v53 = vmul.f32 %v2756_v50, %v2756_v50 }
 0xa5c   : > { %v1389_v54 = vadd.f32 %v1385_v20, %v1384_v51 }
 0xa5d   : > { %v1386_v55 = vadd.f32 %v1383_v53, %v1382_v52 }
 0xa5e   : > { %1390 = vadd.xlane.f32.xlu0 %v1389_v54 }
 0xa5f   : > { %1387 = vadd.xlane.f32.xlu1 %v1386_v55 }
 0xa70   : > { %1492 = vperm.xlu1 %2019, %v2553_v58  }
 0xa74   : > { %1488 = vperm.xlu0 %2018, %v2559_v59  }
 0xa78   : > { %2024 = vset.pattern.permute.xlu0 %v2256_v5 }
 0xaeb   : > { %v1391_v56 = vpop.xlane.xlu0 %1390 }
 0xaec   : > { %v1388_v57 = vpop.xlane.xlu1 %1387 }
 0xaed   : > { %v1864_v60 = vpack.c.bf16 %v1391_v56, %v1388_v57 }
 0xaef   : > { %1865 = vmatprep.subr.bf16.mxu0 %v1864_v60 }
 0xaf0   : > { %1867 = vmatpush3.bf16.msra.mxu0 %v1864_v60  ;;  %v1493_v17 = vpop.permute.xlu1 %1492 }
 0xaf1   : > { %1560 = vmatprep.subr.mxu0 %v2069_v61 }
 0xaf3   : > { %1850 = vmatmul.mubr.msk.f32.vlgmr.msra.gmra.mrb[8].mxu0 %vm465_vm6, %v2595_v24  ;;  %v2255_v24 = vmov 6   ;;  %v1489_v23 = vpop.permute.xlu0 %1488 }
 0xaf4   : > { %1561 = vmatpush1.msra.mxu0 %v2070_v62  ;;  %1624 = vmatprep.mubr.f32.mxu0 %v2253_v63 }
 0xaf5   : > { %2020 = vset.pattern.permute.xlu1 %v2255_v24 }
 0xaf6   : > { %1500 = vperm.xlu1 %2020, %v2559_v59  }
 0xaf7   : > { %1798 = vmatmul.mubr.msk.f32.vlgmr.msra.gmra.mrb[10].mxu0 %vm1553_vm2, %v1539_v0 }
 0xaf8   : > { %1630 = vmatprep.mubr.f32.mxu0 %v2253_v63 }
 0xafa   : > { %2021 = vset.pattern.permute.xlu1 %v2234_v1 }
 0xafb   : > { %1799 = vmatmul.mubr.msk.f32.gmra.mrb[12].mxu0 %vm1553_vm2, %v1540_v2 }
 0xb75   : > { %v1501_v18 = vpop.permute.xlu1 %1500 }
 0xbc6   : > { %v1851_v9 = vpop.f32.mrb[8].mxu0 }
 0xbc7   : > { %v1468_v13 = vmax.f32 %v1851_v9, 0.0  ;;  %v1458_v6 = vpop.f32.mrb[9].mxu0 }
 0xbc8   : > { %v1467_v7 = vmax.f32 %v1458_v6, 0.0 }
 0xbc9   : > { %v1470_v4 = vadd.f32 1e-05, %v1468_v13 }
 0xbca   : > { %v1469_v8 = vadd.f32 1e-05, %v1467_v7  ;;  %v1626_v1 = vpop.f32.mrb[10].mxu0 }
 0xbcb   : > { %2049 = vrsqrt.f32 %v1470_v4  ;;  %v1628_v15 = vpop.f32.mrb[11].mxu0 }
 0xbcc   : > { %2051 = vrsqrt.f32 %v1469_v8 }
 0xbce   : > { %v1632_v16 = vpop.f32.mrb[12].mxu0 }
 0xbcf   : > { %v1634_v12 = vpop.f32.mrb[13].mxu0 }
 0xbd5   : > { %v2050_v11 = vpop.eup %2049 }
 0xbd6   : > { %1480 = vperm.xlu1 %2021, %v2050_v11   ;;  %v2052_v14 = vpop.eup %2051 }
 0xbda   : > { %1475 = vperm.xlu1 %2021, %v2052_v14  }
 0xbde   : > { %2022 = vset.pattern.permute.xlu1 %v2255_v24 }
 0xbdf   : > { %1504 = vperm.xlu1 %2022, %v2553_v58  }
 0xbe3   : > { %2023 = vset.pattern.permute.xlu1 %v2256_v5 }
 0xbe4   : > { %1545 = vperm.xlu1 %2023, %v2559_v59  }
 0xbe8   : > { %1550 = vperm.xlu1 %2023, %v2553_v58  }
 0xc55   : > { %v1481_v10 = vpop.permute.xlu1 %1480 }
 0xc56   : > { %v1485_v19 = vmul.f32 %v1481_v10, %v2750_v46  ;;  %v1486_v21 = vmul.f32 %v1481_v10, %v2752_v47 }
 0xc58   : > { %v1497_v58 = vmul.f32 %v1493_v17, %v1485_v19  ;;  %v1498_v30 = vmul.f32 %v1493_v17, %v1486_v21 }
 0xc59   : > { %v1476_v22 = vpop.permute.xlu1 %1475 }
 0xc5a   : > { %v1483_v25 = vmul.f32 %v1476_v22, %v2754_v49  ;;  %v1484_v26 = vmul.f32 %v1476_v22, %v2756_v50 }
 0xc5c   : > { %v1495_v59 = vmul.f32 %v1489_v23, %v1483_v25  ;;  %v1496_v27 = vmul.f32 %v1489_v23, %v1484_v26 }
 0xc5e   : > { %v1507_v33 = vadd.f32 %v1501_v18, %v1495_v59  ;;  %v1508_v34 = vadd.f32 %v1501_v18, %v1496_v27  ;;  %v1505_v35 = vpop.permute.xlu1 %1504 }
 0xc5f   : > { %v1509_v36 = vadd.f32 %v1505_v35, %v1497_v58  ;;  %v1510_v37 = vadd.f32 %v1505_v35, %v1498_v30 }
 0xc60   : > { %v1794_v28 = vmul.f32 -1.442695, %v1507_v33  ;;  %v1795_v38 = vmul.f32 -1.442695, %v1508_v34 }
 0xc61   : > { %v1796_v29 = vmul.f32 -1.442695, %v1509_v36  ;;  %v1797_v31 = vmul.f32 -1.442695, %v1510_v37 }
 0xc62   : > { %2053 = vpow2.f32 %v1794_v28 }
 0xc63   : > { %2055 = vpow2.f32 %v1795_v38  ;;  %v1546_v46 = vpop.permute.xlu1 %1545 }
 0xc64   : > { %2057 = vpow2.f32 %v1796_v29  ;;  %v1627_v51 = vadd.f32 %v1626_v1, %v1546_v46  ;;  %v1629_v53 = vadd.f32 %v1628_v15, %v1546_v46 }
 0xc65   : > { %2059 = vpow2.f32 %v1797_v31 }
 0xc67   : > { %v1551_v48 = vpop.permute.xlu1 %1550 }
 0xc68   : > { %v1633_v57 = vadd.f32 %v1632_v16, %v1551_v48  ;;  %v1635_v62 = vadd.f32 %v1634_v12, %v1551_v48 }
 0xc6c   : > { %v2054_v32 = vpop.eup %2053 }
 0xc6d   : > { %v2056_v39 = vpop.eup %2055  ;;  %v1523_v40 = vadd.f32 1.0, %v2054_v32 }
 0xc6e   : > { %v2058_v41 = vpop.eup %2057  ;;  %v1524_v42 = vadd.f32 1.0, %v2056_v39 }
 0xc6f   : > { %v2060_v43 = vpop.eup %2059  ;;  %2061 = vrcp.f32 %v1523_v40  ;;  %v1525_v44 = vadd.f32 1.0, %v2058_v41 }
 0xc70   : > { %2063 = vrcp.f32 %v1524_v42  ;;  %v1526_v45 = vadd.f32 1.0, %v2060_v43 }
 0xc71   : > { %2065 = vrcp.f32 %v1525_v44 }
 0xc72   : > { %2067 = vrcp.f32 %v1526_v45 }
 0xc79   : > { %v2062_v47 = vpop.eup %2061 }
 0xc7a   : > { %v2064_v49 = vpop.eup %2063  ;;  %v1535_v50 = vmul.f32 %v2062_v47, %v1507_v33 }
 0xc7b   : > { %v2066_v20 = vpop.eup %2065  ;;  %v1536_v52 = vmul.f32 %v2064_v49, %v1508_v34 }
 0xc7c   : > { %v2068_v54 = vpop.eup %2067  ;;  %v1537_v55 = vmul.f32 %v2066_v20, %v1509_v36  ;;  %v1637_v56 = vadd.f32 %v1627_v51, %v1535_v50 }
 0xc7d   : > { %v1538_v60 = vmul.f32 %v2068_v54, %v1510_v37  ;;  %v1638_v61 = vadd.f32 %v1629_v53, %v1536_v52 }
 0xc7e   : > { %1641 = vst [vmem:[%s378_s27] sm:$0xff] %v1637_v56  ;;  %v1639_v63 = vadd.f32 %v1633_v57, %v1537_v55 }
 0xc7f   : > { %1642 = vst [vmem:[%s378_s27 + $0x8] sm:$0xff] %v1638_v61  ;;  %v1640_v0 = vadd.f32 %v1635_v62, %v1538_v60 }
 0xc80   : > { %1643 = vst [vmem:[%s378_s27 + $0x10] sm:$0xff] %v1639_v63 }
 0xc81   : > { %1644 = vst [vmem:[%s378_s27 + $0x18] sm:$0xff] %v1640_v0 }
 0xc82   : > { %2168 = shalt.err (!%p2165_p9)
}
 0xc83   : > { %s2169_s26 = scalar_lea.hbm %s2794_s20, 512  ;;  %s2173_s24 = scalar_lea.hbm %s2847_s9, 1024 }
 0xc84   : > { %p2170_p2 = scmp.ne.s32.totalorder %s2794_s20, %s2169_s26  ;;  %p2174_p5 = scmp.lt.u32.totalorder %s2794_s20, %s2847_s9 }
 0xc85   : > { %p2175_p10 = scmp.lt.u32.totalorder %s2173_s24, %s2169_s26  ;;  %p2177_p12 = scmp.lt.u32.totalorder %s2169_s26, %s2794_s20 }
 0xc86   : > { %p2171_p3 = pnand %p2170_p2, %p2880_p7 }
 0xc87   : > { %p2176_p4 = por %p2175_p10, %p2174_p5 }
 0xc88   : > { %p2172_p0 = pneg %p2171_p3 }
 0xc89   : > { %p2178_p8 = por %p2177_p12, %p2176_p4 }
 0xc8b   : > { %p2179_p11 = pnand %p2178_p8, %p2172_p0 }
 0xc8d   : > { %2182 = shalt.err (!%p2179_p11)
}
 0xc8e   : > { %s2258_s27 = smov 256  }
 0xc8f   : > { %1880 = dma.vmem_to_hbm [thread:$0]  (%p2880_p7), %s2789_s29, 512, %s2794_s20, %s2796_s13, %s2258_s27, %s2258_s27, %s2237_s14  }
 0xc90 PF: > { %s2881_s30 = sld [smem:[#allocation14_spill]]  ;;  %s2882_s18 = sld [smem:[#allocation18_spill]] }
 0xc91   : > { %p1902_p13 = scmp.ge.s32.totalorder %s2225_s12, 2 }
 0xc96   : > { %s1674_s15 = sand.u32 1, %s2881_s30   ;;  %p2883_p1 = scmp.ne.s32.totalorder %s2882_s18, 0 }
 0xc97   : > { %s1675_s16 = scalar_lea.sflag [#allocation6], %s1674_s15 }
 0xc98   : > { %p1893_p6 = pnand %p1902_p13, %p2883_p1 }
 0xc9a   : > { %2208 = dma.done.wait (!%p1893_p6), %s1675_s16, 512  }
 0xc9b   : > { %2210 = vsyncadd (!%p1893_p6), %s1675_s16, 4294966784  ;;  %s2884_s12 = sld [smem:[#allocation16_spill]]  ;;  %s2885_s17 = sld [smem:[#allocation15_spill]] }
 0xc9c   : > { %s2886_s11 = sld [smem:[#allocation17_spill]]  ;;  %s2887_s30 = smov %s2217_s10 }
 0xca1   : > { %p21_p9 = scmp.ge.s32.totalorder %s2884_s12, 4   ;;  %s2888_s10 = smov %s2885_s17 }
 0xca3   :  { %23 = sbr.rel (!%p21_p9) target bundleno = 5 (0x5), region = 108 }
 0xcaa   :  { %1680 = vsyncpa [#allocation5], 1 }
 0xcab   :  { %1682 = vsyncpa [#allocation5 + $0x1], 1 }
 0xcac   :  { %1683 = vsyncpa [#allocation8], 1 }
 0xcad   :  { %1684 = vsyncpa [#allocation6], 1 }
 0xcae   :  { %1686 = vsyncpa [#allocation6 + $0x1], 1 }

</bundles_post_ra>
